<compile_context>
chip_gen: v6e
topology: v6e:2x2x1
jax: 0.10.0
libtpu: 0.0.40
codegen_flags: <defaults>
</compile_context>

<pallas_src>
import functools

import jax
import jax.numpy as jnp
from jax.experimental import pallas as pl
from jax.experimental.pallas import tpu as pltpu

# ------------------------- model config (small, synthetic) -------------------------
VOCAB = 100
HIDDEN = 32
N_LAYERS = 2
N_HEADS = 4
HEAD_DIM = HIDDEN // N_HEADS
INTER = 64
MAX_POS = 16
TYPE_VOCAB = 2
NUM_LABELS = 5
LPAD = 128           # lane-dense padded width for the classifier / logits slab
LN_EPS = 1e-12

# packed small-param slab layout: (SMALL_ROWS, 128) f32, one param per row
R_EMB_G, R_EMB_B, R_CLS_B = 0, 1, 2
R_LAYER0 = 3
ROWS_PER_LAYER = 8
O_QKV_B, O_O_B, O_LN1_G, O_LN1_B, O_I_B, O_F_B, O_LN2_G, O_LN2_B = range(8)
SMALL_ROWS = R_LAYER0 + ROWS_PER_LAYER * N_LAYERS

_VMEM = pl.BlockSpec(memory_space=pltpu.MemorySpace.VMEM)


# ------------------------------- fused Pallas kernel -------------------------------
def _bert_fused_kernel(emb_ref, mask_row_ref, aux_ref, small_ref,
                       wqkv_ref, wo_ref, wi_ref, wf_ref, clsw_ref,
                       out_ref):
    B, S = mask_row_ref.shape
    BS, H = emb_ref.shape
    NH, Dh = N_HEADS, HEAD_DIM
    scale = 1.0 / (Dh ** 0.5)

    def row(r, w):                       # (1, w) f32 slice of the packed small-param slab
        return small_ref[r:r + 1, 0:w]

    def ln(x, g, b):                     # f32 LayerNorm
        mu = jnp.mean(x, axis=-1, keepdims=True)
        var = jnp.mean((x - mu) * (x - mu), axis=-1, keepdims=True)
        return (x - mu) * jax.lax.rsqrt(var + LN_EPS) * g + b

    def mm(x, w):                        # bf16 MXU operands, f32 accumulation
        return jnp.dot(x.astype(jnp.bfloat16), w.astype(jnp.bfloat16),
                       preferred_element_type=jnp.float32)

    mask_col = aux_ref[:, 0:1]                                  # (BS, 1) f32
    labels_col = aux_ref[:, 1:2].astype(jnp.int32)              # (BS, 1) i32

    # additive attention-mask bias built in-register (never hits HBM)
    bias = ((1.0 - mask_row_ref[...]) * -10000.0)[:, None, :]   # (B, 1, S)

    # ---- embedding LayerNorm ----
    x = ln(emb_ref[...], row(R_EMB_G, H), row(R_EMB_B, H))      # (BS, H) f32

    # ---- transformer layers (statically unrolled; all weights VMEM-resident) ----
    # TODO(synk): for realistic BERT sizes, switch the layer loop to an 'arbitrary' grid axis
    # with layer-indexed weight BlockSpecs so only 1-2 layers of weights are live (v7x 64MiB VMEM).
    for l in range(N_LAYERS):
        base = R_LAYER0 + l * ROWS_PER_LAYER

        qkv = mm(x, wqkv_ref[l]) + row(base + O_QKV_B, 3 * H)   # (BS, 3H) f32
        # cast once per layer (hoisted out of the per-head loop)
        q = qkv[:, 0:H].reshape(B, S, H).astype(jnp.bfloat16)
        k = qkv[:, H:2 * H].reshape(B, S, H).astype(jnp.bfloat16)
        v = qkv[:, 2 * H:3 * H].reshape(B, S, H).astype(jnp.bfloat16)

        wo_l = wo_ref[l]                                        # (H, H) bf16
        attn_out = None
        for h in range(NH):
            hs = slice(h * Dh, (h + 1) * Dh)
            s = jnp.einsum("bqd,bkd->bqk", q[:, :, hs], k[:, :, hs],
                           preferred_element_type=jnp.float32) * scale + bias
            s = s - jnp.max(s, axis=-1, keepdims=True)
            p = jnp.exp(s)
            p = p * pl.reciprocal(jnp.sum(p, axis=-1, keepdims=True), approx=True)
            ctx_h = jnp.einsum("bqk,bkd->bqd", p.astype(jnp.bfloat16), v[:, :, hs],
                               preferred_element_type=jnp.float32)       # (B, S, Dh)
            # per-head partial output projection (row-block of W_o) summed -> no lane concat
            part = jnp.dot(ctx_h.reshape(BS, Dh).astype(jnp.bfloat16), wo_l[hs, :],
                           preferred_element_type=jnp.float32)           # (BS, H)
            attn_out = part if attn_out is None else attn_out + part
        attn_out = attn_out + row(base + O_O_B, H)
        x = ln(x + attn_out, row(base + O_LN1_G, H), row(base + O_LN1_B, H))

        inter = mm(x, wi_ref[l]) + row(base + O_I_B, INTER)              # (BS, INTER)
        # TODO(synk): HF BERT uses exact erf-GELU; tanh approximation used (EUP-friendly lowering).
        inter = jax.nn.gelu(inter, approximate=True)
        ffn_out = mm(inter, wf_ref[l]) + row(base + O_F_B, H)
        x = ln(x + ffn_out, row(base + O_LN2_G, H), row(base + O_LN2_B, H))

    # ---- classifier head: lane-dense 128-wide logits slab (cols >= NUM_LABELS are zero) ----
    logits = mm(x, clsw_ref[...]) + row(R_CLS_B, LPAD)                   # (BS, LPAD)

    # ---- masked token-level cross-entropy over the first NUM_LABELS lanes ----
    lane = jax.lax.broadcasted_iota(jnp.int32, (BS, LPAD), 1)
    valid = lane < NUM_LABELS
    z = jnp.where(valid, logits, -1e30)
    z = z - jnp.max(z, axis=-1, keepdims=True)
    sumexp = jnp.sum(jnp.where(valid, jnp.exp(z), 0.0), axis=-1, keepdims=True)
    lse = jnp.log(sumexp)
    onehot = (lane == labels_col).astype(jnp.float32)                    # (BS, LPAD)
    picked = jnp.sum(z * onehot, axis=-1, keepdims=True)
    nll = lse - picked                                                   # (BS, 1)
    # TODO(synk): HF additionally honors ignore_index=-100 in labels; only mask==1 tokens here.
    total = jnp.sum(nll * mask_col, axis=0, keepdims=True)               # (1, 1)
    count = jnp.maximum(jnp.sum(mask_col, axis=0, keepdims=True), 1.0)   # (1, 1)
    loss = total / count

    # fold the scalar loss into spare lane NUM_LABELS of the logits slab (no extra output DMA)
    out_ref[...] = jnp.where(lane == NUM_LABELS, loss, logits)


def _fused_forward(params, emb, mask_row, aux):
    BS = emb.shape[0]
    # TODO(synk): for larger B*S, add a row-tiled grid axis marked 'parallel' (weights get
    # constant index_maps) so v7x's second TensorCore is used and writeback overlaps compute.
    return pl.pallas_call(
        _bert_fused_kernel,
        out_shape=jax.ShapeDtypeStruct((BS, LPAD), jnp.float32),
        in_specs=[_VMEM] * 9,
        out_specs=_VMEM,
    )(emb, mask_row, aux, params["small"],
      params["wqkv"], params["wo"], params["wi"], params["wf"], params["cls_w"])


# ------------------------------ parameter init ------------------------------
def init_params(key):
    keys = iter(jax.random.split(key, 16))

    def nrm(shape, dtype=jnp.float32):
        return (0.02 * jax.random.normal(next(keys), shape, dtype=jnp.float32)).astype(dtype)

    H, I, L = HIDDEN, INTER, N_LAYERS

    # packed small-param slab: LayerNorm gammas = 1, everything else (betas, biases) = 0
    small = jnp.zeros((SMALL_ROWS, LPAD), jnp.float32)
    small = small.at[R_EMB_G, :H].set(1.0)
    for l in range(L):
        base = R_LAYER0 + l * ROWS_PER_LAYER
        small = small.at[base + O_LN1_G, :H].set(1.0)
        small = small.at[base + O_LN2_G, :H].set(1.0)

    # classifier weight padded to a lane-dense LPAD-wide slab (zeros beyond NUM_LABELS)
    cls_w = jnp.zeros((H, LPAD), jnp.float32).at[:, :NUM_LABELS].set(
        0.02 * jax.random.normal(next(keys), (H, NUM_LABELS), dtype=jnp.float32))

    return {
        "word_emb": nrm((VOCAB, H)),
        "pos_emb": nrm((MAX_POS, H)),
        "type_emb": nrm((TYPE_VOCAB, H)),
        "small": small,
        # per-layer bf16 weight stacks (leading axis = layer) for the MXU
        "wqkv": nrm((L, H, 3 * H), jnp.bfloat16),   # [wq | wk | wv] fused along output dim
        "wo": nrm((L, H, H), jnp.bfloat16),
        "wi": nrm((L, H, I), jnp.bfloat16),
        "wf": nrm((L, I, H), jnp.bfloat16),
        "cls_w": cls_w.astype(jnp.bfloat16),
    }


# ------------------------------- forward pass -------------------------------
def bert_token_classification_forward(params, ids, mask, labels):
    B, S = ids.shape
    BS = B * S

    # Embedding row-gather + pos/type add kept as tiny XLA glue; everything from the
    # embedding LayerNorm to the loss runs in ONE Pallas call.
    we = jnp.take(params["word_emb"], ids.reshape(-1), axis=0)            # (BS, H)
    pe = params["pos_emb"][:S]                                            # (S, H)
    te = params["type_emb"][0]                                            # (H,)  token_type_ids == 0
    emb = (we.reshape(B, S, HIDDEN) + pe[None, :, :] + te[None, None, :]).reshape(BS, HIDDEN)

    mask_row = mask.astype(jnp.float32)                                   # (B, S) for attn bias
    aux = jnp.stack([mask_row.reshape(-1),
                     labels.reshape(-1).astype(jnp.float32)], axis=1)     # (BS, 2): [mask, label]

    out = _fused_forward(params, emb, mask_row, aux)                      # (BS, LPAD)
    loss = out[0, NUM_LABELS]                                             # folded scalar loss
    logits = out[:, :NUM_LABELS].reshape(B, S, NUM_LABELS)
    return loss, logits


# ---------------------------------- driver ----------------------------------
if __name__ == "__main__":
    B, S = 2, 8
    key = jax.random.PRNGKey(0)
    k_param, k_ids, k_lab = jax.random.split(key, 3)

    params = init_params(k_param)
    ids = jax.random.randint(k_ids, (B, S), 0, VOCAB, dtype=jnp.int32)
    mask = jnp.array([[1, 1, 1, 1, 1, 1, 1, 1],
                      [1, 1, 1, 1, 1, 0, 0, 0]], dtype=jnp.int32)
    labels = jax.random.randint(k_lab, (B, S), 0, NUM_LABELS, dtype=jnp.int32)

    fwd = jax.jit(functools.partial(bert_token_classification_forward, params))
    loss, logits = fwd(ids, mask, labels)
    jax.block_until_ready((loss, logits))

    assert logits.shape == (B, S, NUM_LABELS)
    assert jnp.isfinite(loss)
    print("KERNEL_OK")
</pallas_src>

<mosaic_0001>
module attributes {stable_mosaic.version = 11 : i64} {
  func.func @_bert_fused_kernel(%arg0: memref<16x32xf32, #tpu.memory_space<vmem>>, %arg1: memref<2x8xf32, #tpu.memory_space<vmem>>, %arg2: memref<16x2xf32, #tpu.memory_space<vmem>>, %arg3: memref<19x128xf32, #tpu.memory_space<vmem>>, %arg4: memref<2x32x96xbf16, #tpu.memory_space<vmem>>, %arg5: memref<2x32x32xbf16, #tpu.memory_space<vmem>>, %arg6: memref<2x32x64xbf16, #tpu.memory_space<vmem>>, %arg7: memref<2x64x32xbf16, #tpu.memory_space<vmem>>, %arg8: memref<32x128xbf16, #tpu.memory_space<vmem>>, %arg9: memref<16x128xf32, #tpu.memory_space<vmem>>) attributes {dimension_semantics = [], scalar_prefetch = 0 : i64, scratch_operands = 0 : i64, tpu.core_type = #tpu.core_type<tc>} {
    %c0 = arith.constant 0 : index
    %c0_0 = arith.constant 0 : index
    %0 = vector.load %arg2[%c0, %c0_0] : memref<16x2xf32, #tpu.memory_space<vmem>>, vector<16x1xf32>
    %c0_1 = arith.constant 0 : index
    %c1 = arith.constant 1 : index
    %1 = vector.load %arg2[%c0_1, %c1] : memref<16x2xf32, #tpu.memory_space<vmem>>, vector<16x1xf32>
    %2 = arith.fptosi %1 : vector<16x1xf32> to vector<16x1xi32>
    %c0_2 = arith.constant 0 : index
    %c0_3 = arith.constant 0 : index
    %3 = vector.load %arg1[%c0_2, %c0_3] : memref<2x8xf32, #tpu.memory_space<vmem>>, vector<2x8xf32>
    %cst = arith.constant 1.000000e+00 : f32
    %4 = vector.broadcast %cst : f32 to vector<2x8xf32>
    %5 = arith.subf %4, %3 : vector<2x8xf32>
    %cst_4 = arith.constant -1.000000e+04 : f32
    %6 = vector.broadcast %cst_4 : f32 to vector<2x8xf32>
    %7 = arith.mulf %5, %6 : vector<2x8xf32>
    %8 = vector.shape_cast %7 : vector<2x8xf32> to vector<2x1x8xf32>
    %c0_5 = arith.constant 0 : index
    %c0_6 = arith.constant 0 : index
    %9 = vector.load %arg0[%c0_5, %c0_6] : memref<16x32xf32, #tpu.memory_space<vmem>>, vector<16x32xf32>
    %c0_7 = arith.constant 0 : index
    %c0_8 = arith.constant 0 : index
    %10 = vector.load %arg3[%c0_7, %c0_8] : memref<19x128xf32, #tpu.memory_space<vmem>>, vector<1x32xf32>
    %c1_9 = arith.constant 1 : index
    %c0_10 = arith.constant 0 : index
    %11 = vector.load %arg3[%c1_9, %c0_10] : memref<19x128xf32, #tpu.memory_space<vmem>>, vector<1x32xf32>
    %cst_11 = arith.constant dense<0.000000e+00> : vector<16xf32>
    %12 = vector.multi_reduction <add>, %9, %cst_11 [1] : vector<16x32xf32> to vector<16xf32>
    %13 = vector.shape_cast %12 : vector<16xf32> to vector<16x1xf32>
    %cst_12 = arith.constant 3.200000e+01 : f32
    %14 = vector.broadcast %cst_12 : f32 to vector<16x1xf32>
    %15 = arith.divf %13, %14 : vector<16x1xf32>
    %16 = vector.broadcast %15 : vector<16x1xf32> to vector<16x32xf32>
    %17 = arith.subf %9, %16 : vector<16x32xf32>
    %18 = vector.broadcast %15 : vector<16x1xf32> to vector<16x32xf32>
    %19 = arith.subf %9, %18 : vector<16x32xf32>
    %20 = arith.mulf %17, %19 : vector<16x32xf32>
    %cst_13 = arith.constant dense<0.000000e+00> : vector<16xf32>
    %21 = vector.multi_reduction <add>, %20, %cst_13 [1] : vector<16x32xf32> to vector<16xf32>
    %22 = vector.shape_cast %21 : vector<16xf32> to vector<16x1xf32>
    %cst_14 = arith.constant 3.200000e+01 : f32
    %23 = vector.broadcast %cst_14 : f32 to vector<16x1xf32>
    %24 = arith.divf %22, %23 : vector<16x1xf32>
    %25 = vector.broadcast %15 : vector<16x1xf32> to vector<16x32xf32>
    %26 = arith.subf %9, %25 : vector<16x32xf32>
    %cst_15 = arith.constant 9.99999996E-13 : f32
    %27 = vector.broadcast %cst_15 : f32 to vector<16x1xf32>
    %28 = arith.addf %24, %27 : vector<16x1xf32>
    %29 = math.rsqrt %28 : vector<16x1xf32>
    %30 = vector.broadcast %29 : vector<16x1xf32> to vector<16x32xf32>
    %31 = arith.mulf %26, %30 : vector<16x32xf32>
    %32 = vector.broadcast %10 : vector<1x32xf32> to vector<16x32xf32>
    %33 = arith.mulf %31, %32 : vector<16x32xf32>
    %34 = vector.broadcast %11 : vector<1x32xf32> to vector<16x32xf32>
    %35 = arith.addf %33, %34 : vector<16x32xf32>
    %c0_16 = arith.constant 0 : index
    %c0_17 = arith.constant 0 : index
    %c0_18 = arith.constant 0 : index
    %36 = vector.load %arg4[%c0_16, %c0_17, %c0_18] : memref<2x32x96xbf16, #tpu.memory_space<vmem>>, vector<1x32x96xbf16>
    %37 = vector.shape_cast %36 : vector<1x32x96xbf16> to vector<32x96xbf16>
    %38 = arith.truncf %35 : vector<16x32xf32> to vector<16x32xbf16>
    %cst_19 = arith.constant dense<0.000000e+00> : vector<16x96xf32>
    %39 = tpu.matmul %38, %37, %cst_19 {dimension_numbers = #tpu.dot_dimension_numbers<[1], [0], [0], [1], [0, 0, 1, 1], [], []>} : vector<16x32xbf16>, vector<32x96xbf16>, vector<16x96xf32> -> vector<16x96xf32>
    %c3 = arith.constant 3 : index
    %c0_20 = arith.constant 0 : index
    %40 = vector.load %arg3[%c3, %c0_20] : memref<19x128xf32, #tpu.memory_space<vmem>>, vector<1x96xf32>
    %41 = vector.broadcast %40 : vector<1x96xf32> to vector<16x96xf32>
    %42 = arith.addf %39, %41 : vector<16x96xf32>
    %43 = vector.extract_strided_slice %42 {offsets = [0, 0], sizes = [16, 32], strides = [1, 1]} : vector<16x96xf32> to vector<16x32xf32>
    %44 = vector.shape_cast %43 : vector<16x32xf32> to vector<2x8x32xf32>
    %45 = arith.truncf %44 : vector<2x8x32xf32> to vector<2x8x32xbf16>
    %46 = vector.extract_strided_slice %42 {offsets = [0, 32], sizes = [16, 32], strides = [1, 1]} : vector<16x96xf32> to vector<16x32xf32>
    %47 = vector.shape_cast %46 : vector<16x32xf32> to vector<2x8x32xf32>
    %48 = arith.truncf %47 : vector<2x8x32xf32> to vector<2x8x32xbf16>
    %49 = vector.extract_strided_slice %42 {offsets = [0, 64], sizes = [16, 32], strides = [1, 1]} : vector<16x96xf32> to vector<16x32xf32>
    %50 = vector.shape_cast %49 : vector<16x32xf32> to vector<2x8x32xf32>
    %51 = arith.truncf %50 : vector<2x8x32xf32> to vector<2x8x32xbf16>
    %c0_21 = arith.constant 0 : index
    %c0_22 = arith.constant 0 : index
    %c0_23 = arith.constant 0 : index
    %52 = vector.load %arg5[%c0_21, %c0_22, %c0_23] : memref<2x32x32xbf16, #tpu.memory_space<vmem>>, vector<1x32x32xbf16>
    %53 = vector.shape_cast %52 : vector<1x32x32xbf16> to vector<32x32xbf16>
    %54 = vector.extract_strided_slice %45 {offsets = [0, 0, 0], sizes = [2, 8, 8], strides = [1, 1, 1]} : vector<2x8x32xbf16> to vector<2x8x8xbf16>
    %55 = vector.extract_strided_slice %48 {offsets = [0, 0, 0], sizes = [2, 8, 8], strides = [1, 1, 1]} : vector<2x8x32xbf16> to vector<2x8x8xbf16>
    "tpu.trace_start"() <{level = 10 : i32, message = "bqd,bkd->bqk"}> : () -> ()
    %cst_24 = arith.constant dense<0.000000e+00> : vector<2x8x8xf32>
    %56 = tpu.matmul %54, %55, %cst_24 {dimension_numbers = #tpu.dot_dimension_numbers<[2], [2], [1], [1], [0, 0, 0, 1, 1, 1], [0], [0]>} : vector<2x8x8xbf16>, vector<2x8x8xbf16>, vector<2x8x8xf32> -> vector<2x8x8xf32>
    "tpu.trace_stop"() : () -> ()
    %cst_25 = arith.constant 0.353553385 : f32
    %57 = vector.broadcast %cst_25 : f32 to vector<2x8x8xf32>
    %58 = arith.mulf %56, %57 : vector<2x8x8xf32>
    %59 = vector.broadcast %8 : vector<2x1x8xf32> to vector<2x8x8xf32>
    %60 = arith.addf %58, %59 : vector<2x8x8xf32>
    %cst_26 = arith.constant dense<0xFF800000> : vector<2x8xf32>
    %61 = vector.multi_reduction <maximumf>, %60, %cst_26 [2] : vector<2x8x8xf32> to vector<2x8xf32>
    %62 = vector.shape_cast %61 : vector<2x8xf32> to vector<2x8x1xf32>
    %63 = vector.broadcast %62 : vector<2x8x1xf32> to vector<2x8x8xf32>
    %64 = arith.subf %60, %63 : vector<2x8x8xf32>
    %65 = math.exp %64 : vector<2x8x8xf32>
    %cst_27 = arith.constant dense<0.000000e+00> : vector<2x8xf32>
    %66 = vector.multi_reduction <add>, %65, %cst_27 [2] : vector<2x8x8xf32> to vector<2x8xf32>
    %67 = vector.shape_cast %66 : vector<2x8xf32> to vector<2x8x1xf32>
    %68 = tpu.reciprocal %67 {approx = true} : vector<2x8x1xf32> -> vector<2x8x1xf32>
    %69 = vector.broadcast %68 : vector<2x8x1xf32> to vector<2x8x8xf32>
    %70 = arith.mulf %65, %69 : vector<2x8x8xf32>
    %71 = arith.truncf %70 : vector<2x8x8xf32> to vector<2x8x8xbf16>
    %72 = vector.extract_strided_slice %51 {offsets = [0, 0, 0], sizes = [2, 8, 8], strides = [1, 1, 1]} : vector<2x8x32xbf16> to vector<2x8x8xbf16>
    "tpu.trace_start"() <{level = 10 : i32, message = "bqk,bkd->bqd"}> : () -> ()
    %cst_28 = arith.constant dense<0.000000e+00> : vector<2x8x8xf32>
    %73 = tpu.matmul %71, %72, %cst_28 {dimension_numbers = #tpu.dot_dimension_numbers<[2], [1], [1], [2], [0, 0, 0, 1, 1, 2], [0], [0]>} : vector<2x8x8xbf16>, vector<2x8x8xbf16>, vector<2x8x8xf32> -> vector<2x8x8xf32>
    "tpu.trace_stop"() : () -> ()
    %74 = vector.shape_cast %73 : vector<2x8x8xf32> to vector<16x8xf32>
    %75 = arith.truncf %74 : vector<16x8xf32> to vector<16x8xbf16>
    %76 = vector.extract_strided_slice %53 {offsets = [0, 0], sizes = [8, 32], strides = [1, 1]} : vector<32x32xbf16> to vector<8x32xbf16>
    %cst_29 = arith.constant dense<0.000000e+00> : vector<16x32xf32>
    %77 = tpu.matmul %75, %76, %cst_29 {dimension_numbers = #tpu.dot_dimension_numbers<[1], [0], [0], [1], [0, 0, 1, 1], [], []>} : vector<16x8xbf16>, vector<8x32xbf16>, vector<16x32xf32> -> vector<16x32xf32>
    %78 = vector.extract_strided_slice %45 {offsets = [0, 0, 8], sizes = [2, 8, 8], strides = [1, 1, 1]} : vector<2x8x32xbf16> to vector<2x8x8xbf16>
    %79 = vector.extract_strided_slice %48 {offsets = [0, 0, 8], sizes = [2, 8, 8], strides = [1, 1, 1]} : vector<2x8x32xbf16> to vector<2x8x8xbf16>
    "tpu.trace_start"() <{level = 10 : i32, message = "bqd,bkd->bqk"}> : () -> ()
    %cst_30 = arith.constant dense<0.000000e+00> : vector<2x8x8xf32>
    %80 = tpu.matmul %78, %79, %cst_30 {dimension_numbers = #tpu.dot_dimension_numbers<[2], [2], [1], [1], [0, 0, 0, 1, 1, 1], [0], [0]>} : vector<2x8x8xbf16>, vector<2x8x8xbf16>, vector<2x8x8xf32> -> vector<2x8x8xf32>
    "tpu.trace_stop"() : () -> ()
    %cst_31 = arith.constant 0.353553385 : f32
    %81 = vector.broadcast %cst_31 : f32 to vector<2x8x8xf32>
    %82 = arith.mulf %80, %81 : vector<2x8x8xf32>
    %83 = vector.broadcast %8 : vector<2x1x8xf32> to vector<2x8x8xf32>
    %84 = arith.addf %82, %83 : vector<2x8x8xf32>
    %cst_32 = arith.constant dense<0xFF800000> : vector<2x8xf32>
    %85 = vector.multi_reduction <maximumf>, %84, %cst_32 [2] : vector<2x8x8xf32> to vector<2x8xf32>
    %86 = vector.shape_cast %85 : vector<2x8xf32> to vector<2x8x1xf32>
    %87 = vector.broadcast %86 : vector<2x8x1xf32> to vector<2x8x8xf32>
    %88 = arith.subf %84, %87 : vector<2x8x8xf32>
    %89 = math.exp %88 : vector<2x8x8xf32>
    %cst_33 = arith.constant dense<0.000000e+00> : vector<2x8xf32>
    %90 = vector.multi_reduction <add>, %89, %cst_33 [2] : vector<2x8x8xf32> to vector<2x8xf32>
    %91 = vector.shape_cast %90 : vector<2x8xf32> to vector<2x8x1xf32>
    %92 = tpu.reciprocal %91 {approx = true} : vector<2x8x1xf32> -> vector<2x8x1xf32>
    %93 = vector.broadcast %92 : vector<2x8x1xf32> to vector<2x8x8xf32>
    %94 = arith.mulf %89, %93 : vector<2x8x8xf32>
    %95 = arith.truncf %94 : vector<2x8x8xf32> to vector<2x8x8xbf16>
    %96 = vector.extract_strided_slice %51 {offsets = [0, 0, 8], sizes = [2, 8, 8], strides = [1, 1, 1]} : vector<2x8x32xbf16> to vector<2x8x8xbf16>
    "tpu.trace_start"() <{level = 10 : i32, message = "bqk,bkd->bqd"}> : () -> ()
    %cst_34 = arith.constant dense<0.000000e+00> : vector<2x8x8xf32>
    %97 = tpu.matmul %95, %96, %cst_34 {dimension_numbers = #tpu.dot_dimension_numbers<[2], [1], [1], [2], [0, 0, 0, 1, 1, 2], [0], [0]>} : vector<2x8x8xbf16>, vector<2x8x8xbf16>, vector<2x8x8xf32> -> vector<2x8x8xf32>
    "tpu.trace_stop"() : () -> ()
    %98 = vector.shape_cast %97 : vector<2x8x8xf32> to vector<16x8xf32>
    %99 = arith.truncf %98 : vector<16x8xf32> to vector<16x8xbf16>
    %100 = vector.extract_strided_slice %53 {offsets = [8, 0], sizes = [8, 32], strides = [1, 1]} : vector<32x32xbf16> to vector<8x32xbf16>
    %cst_35 = arith.constant dense<0.000000e+00> : vector<16x32xf32>
    %101 = tpu.matmul %99, %100, %cst_35 {dimension_numbers = #tpu.dot_dimension_numbers<[1], [0], [0], [1], [0, 0, 1, 1], [], []>} : vector<16x8xbf16>, vector<8x32xbf16>, vector<16x32xf32> -> vector<16x32xf32>
    %102 = arith.addf %77, %101 : vector<16x32xf32>
    %103 = vector.extract_strided_slice %45 {offsets = [0, 0, 16], sizes = [2, 8, 8], strides = [1, 1, 1]} : vector<2x8x32xbf16> to vector<2x8x8xbf16>
    %104 = vector.extract_strided_slice %48 {offsets = [0, 0, 16], sizes = [2, 8, 8], strides = [1, 1, 1]} : vector<2x8x32xbf16> to vector<2x8x8xbf16>
    "tpu.trace_start"() <{level = 10 : i32, message = "bqd,bkd->bqk"}> : () -> ()
    %cst_36 = arith.constant dense<0.000000e+00> : vector<2x8x8xf32>
    %105 = tpu.matmul %103, %104, %cst_36 {dimension_numbers = #tpu.dot_dimension_numbers<[2], [2], [1], [1], [0, 0, 0, 1, 1, 1], [0], [0]>} : vector<2x8x8xbf16>, vector<2x8x8xbf16>, vector<2x8x8xf32> -> vector<2x8x8xf32>
    "tpu.trace_stop"() : () -> ()
    %cst_37 = arith.constant 0.353553385 : f32
    %106 = vector.broadcast %cst_37 : f32 to vector<2x8x8xf32>
    %107 = arith.mulf %105, %106 : vector<2x8x8xf32>
    %108 = vector.broadcast %8 : vector<2x1x8xf32> to vector<2x8x8xf32>
    %109 = arith.addf %107, %108 : vector<2x8x8xf32>
    %cst_38 = arith.constant dense<0xFF800000> : vector<2x8xf32>
    %110 = vector.multi_reduction <maximumf>, %109, %cst_38 [2] : vector<2x8x8xf32> to vector<2x8xf32>
    %111 = vector.shape_cast %110 : vector<2x8xf32> to vector<2x8x1xf32>
    %112 = vector.broadcast %111 : vector<2x8x1xf32> to vector<2x8x8xf32>
    %113 = arith.subf %109, %112 : vector<2x8x8xf32>
    %114 = math.exp %113 : vector<2x8x8xf32>
    %cst_39 = arith.constant dense<0.000000e+00> : vector<2x8xf32>
    %115 = vector.multi_reduction <add>, %114, %cst_39 [2] : vector<2x8x8xf32> to vector<2x8xf32>
    %116 = vector.shape_cast %115 : vector<2x8xf32> to vector<2x8x1xf32>
    %117 = tpu.reciprocal %116 {approx = true} : vector<2x8x1xf32> -> vector<2x8x1xf32>
    %118 = vector.broadcast %117 : vector<2x8x1xf32> to vector<2x8x8xf32>
    %119 = arith.mulf %114, %118 : vector<2x8x8xf32>
    %120 = arith.truncf %119 : vector<2x8x8xf32> to vector<2x8x8xbf16>
    %121 = vector.extract_strided_slice %51 {offsets = [0, 0, 16], sizes = [2, 8, 8], strides = [1, 1, 1]} : vector<2x8x32xbf16> to vector<2x8x8xbf16>
    "tpu.trace_start"() <{level = 10 : i32, message = "bqk,bkd->bqd"}> : () -> ()
    %cst_40 = arith.constant dense<0.000000e+00> : vector<2x8x8xf32>
    %122 = tpu.matmul %120, %121, %cst_40 {dimension_numbers = #tpu.dot_dimension_numbers<[2], [1], [1], [2], [0, 0, 0, 1, 1, 2], [0], [0]>} : vector<2x8x8xbf16>, vector<2x8x8xbf16>, vector<2x8x8xf32> -> vector<2x8x8xf32>
    "tpu.trace_stop"() : () -> ()
    %123 = vector.shape_cast %122 : vector<2x8x8xf32> to vector<16x8xf32>
    %124 = arith.truncf %123 : vector<16x8xf32> to vector<16x8xbf16>
    %125 = vector.extract_strided_slice %53 {offsets = [16, 0], sizes = [8, 32], strides = [1, 1]} : vector<32x32xbf16> to vector<8x32xbf16>
    %cst_41 = arith.constant dense<0.000000e+00> : vector<16x32xf32>
    %126 = tpu.matmul %124, %125, %cst_41 {dimension_numbers = #tpu.dot_dimension_numbers<[1], [0], [0], [1], [0, 0, 1, 1], [], []>} : vector<16x8xbf16>, vector<8x32xbf16>, vector<16x32xf32> -> vector<16x32xf32>
    %127 = arith.addf %102, %126 : vector<16x32xf32>
    %128 = vector.extract_strided_slice %45 {offsets = [0, 0, 24], sizes = [2, 8, 8], strides = [1, 1, 1]} : vector<2x8x32xbf16> to vector<2x8x8xbf16>
    %129 = vector.extract_strided_slice %48 {offsets = [0, 0, 24], sizes = [2, 8, 8], strides = [1, 1, 1]} : vector<2x8x32xbf16> to vector<2x8x8xbf16>
    "tpu.trace_start"() <{level = 10 : i32, message = "bqd,bkd->bqk"}> : () -> ()
    %cst_42 = arith.constant dense<0.000000e+00> : vector<2x8x8xf32>
    %130 = tpu.matmul %128, %129, %cst_42 {dimension_numbers = #tpu.dot_dimension_numbers<[2], [2], [1], [1], [0, 0, 0, 1, 1, 1], [0], [0]>} : vector<2x8x8xbf16>, vector<2x8x8xbf16>, vector<2x8x8xf32> -> vector<2x8x8xf32>
    "tpu.trace_stop"() : () -> ()
    %cst_43 = arith.constant 0.353553385 : f32
    %131 = vector.broadcast %cst_43 : f32 to vector<2x8x8xf32>
    %132 = arith.mulf %130, %131 : vector<2x8x8xf32>
    %133 = vector.broadcast %8 : vector<2x1x8xf32> to vector<2x8x8xf32>
    %134 = arith.addf %132, %133 : vector<2x8x8xf32>
    %cst_44 = arith.constant dense<0xFF800000> : vector<2x8xf32>
    %135 = vector.multi_reduction <maximumf>, %134, %cst_44 [2] : vector<2x8x8xf32> to vector<2x8xf32>
    %136 = vector.shape_cast %135 : vector<2x8xf32> to vector<2x8x1xf32>
    %137 = vector.broadcast %136 : vector<2x8x1xf32> to vector<2x8x8xf32>
    %138 = arith.subf %134, %137 : vector<2x8x8xf32>
    %139 = math.exp %138 : vector<2x8x8xf32>
    %cst_45 = arith.constant dense<0.000000e+00> : vector<2x8xf32>
    %140 = vector.multi_reduction <add>, %139, %cst_45 [2] : vector<2x8x8xf32> to vector<2x8xf32>
    %141 = vector.shape_cast %140 : vector<2x8xf32> to vector<2x8x1xf32>
    %142 = tpu.reciprocal %141 {approx = true} : vector<2x8x1xf32> -> vector<2x8x1xf32>
    %143 = vector.broadcast %142 : vector<2x8x1xf32> to vector<2x8x8xf32>
    %144 = arith.mulf %139, %143 : vector<2x8x8xf32>
    %145 = arith.truncf %144 : vector<2x8x8xf32> to vector<2x8x8xbf16>
    %146 = vector.extract_strided_slice %51 {offsets = [0, 0, 24], sizes = [2, 8, 8], strides = [1, 1, 1]} : vector<2x8x32xbf16> to vector<2x8x8xbf16>
    "tpu.trace_start"() <{level = 10 : i32, message = "bqk,bkd->bqd"}> : () -> ()
    %cst_46 = arith.constant dense<0.000000e+00> : vector<2x8x8xf32>
    %147 = tpu.matmul %145, %146, %cst_46 {dimension_numbers = #tpu.dot_dimension_numbers<[2], [1], [1], [2], [0, 0, 0, 1, 1, 2], [0], [0]>} : vector<2x8x8xbf16>, vector<2x8x8xbf16>, vector<2x8x8xf32> -> vector<2x8x8xf32>
    "tpu.trace_stop"() : () -> ()
    %148 = vector.shape_cast %147 : vector<2x8x8xf32> to vector<16x8xf32>
    %149 = arith.truncf %148 : vector<16x8xf32> to vector<16x8xbf16>
    %150 = vector.extract_strided_slice %53 {offsets = [24, 0], sizes = [8, 32], strides = [1, 1]} : vector<32x32xbf16> to vector<8x32xbf16>
    %cst_47 = arith.constant dense<0.000000e+00> : vector<16x32xf32>
    %151 = tpu.matmul %149, %150, %cst_47 {dimension_numbers = #tpu.dot_dimension_numbers<[1], [0], [0], [1], [0, 0, 1, 1], [], []>} : vector<16x8xbf16>, vector<8x32xbf16>, vector<16x32xf32> -> vector<16x32xf32>
    %152 = arith.addf %127, %151 : vector<16x32xf32>
    %c4 = arith.constant 4 : index
    %c0_48 = arith.constant 0 : index
    %153 = vector.load %arg3[%c4, %c0_48] : memref<19x128xf32, #tpu.memory_space<vmem>>, vector<1x32xf32>
    %154 = vector.broadcast %153 : vector<1x32xf32> to vector<16x32xf32>
    %155 = arith.addf %152, %154 : vector<16x32xf32>
    %156 = arith.addf %35, %155 : vector<16x32xf32>
    %c5 = arith.constant 5 : index
    %c0_49 = arith.constant 0 : index
    %157 = vector.load %arg3[%c5, %c0_49] : memref<19x128xf32, #tpu.memory_space<vmem>>, vector<1x32xf32>
    %c6 = arith.constant 6 : index
    %c0_50 = arith.constant 0 : index
    %158 = vector.load %arg3[%c6, %c0_50] : memref<19x128xf32, #tpu.memory_space<vmem>>, vector<1x32xf32>
    %cst_51 = arith.constant dense<0.000000e+00> : vector<16xf32>
    %159 = vector.multi_reduction <add>, %156, %cst_51 [1] : vector<16x32xf32> to vector<16xf32>
    %160 = vector.shape_cast %159 : vector<16xf32> to vector<16x1xf32>
    %cst_52 = arith.constant 3.200000e+01 : f32
    %161 = vector.broadcast %cst_52 : f32 to vector<16x1xf32>
    %162 = arith.divf %160, %161 : vector<16x1xf32>
    %163 = vector.broadcast %162 : vector<16x1xf32> to vector<16x32xf32>
    %164 = arith.subf %156, %163 : vector<16x32xf32>
    %165 = vector.broadcast %162 : vector<16x1xf32> to vector<16x32xf32>
    %166 = arith.subf %156, %165 : vector<16x32xf32>
    %167 = arith.mulf %164, %166 : vector<16x32xf32>
    %cst_53 = arith.constant dense<0.000000e+00> : vector<16xf32>
    %168 = vector.multi_reduction <add>, %167, %cst_53 [1] : vector<16x32xf32> to vector<16xf32>
    %169 = vector.shape_cast %168 : vector<16xf32> to vector<16x1xf32>
    %cst_54 = arith.constant 3.200000e+01 : f32
    %170 = vector.broadcast %cst_54 : f32 to vector<16x1xf32>
    %171 = arith.divf %169, %170 : vector<16x1xf32>
    %172 = vector.broadcast %162 : vector<16x1xf32> to vector<16x32xf32>
    %173 = arith.subf %156, %172 : vector<16x32xf32>
    %cst_55 = arith.constant 9.99999996E-13 : f32
    %174 = vector.broadcast %cst_55 : f32 to vector<16x1xf32>
    %175 = arith.addf %171, %174 : vector<16x1xf32>
    %176 = math.rsqrt %175 : vector<16x1xf32>
    %177 = vector.broadcast %176 : vector<16x1xf32> to vector<16x32xf32>
    %178 = arith.mulf %173, %177 : vector<16x32xf32>
    %179 = vector.broadcast %157 : vector<1x32xf32> to vector<16x32xf32>
    %180 = arith.mulf %178, %179 : vector<16x32xf32>
    %181 = vector.broadcast %158 : vector<1x32xf32> to vector<16x32xf32>
    %182 = arith.addf %180, %181 : vector<16x32xf32>
    %c0_56 = arith.constant 0 : index
    %c0_57 = arith.constant 0 : index
    %c0_58 = arith.constant 0 : index
    %183 = vector.load %arg6[%c0_56, %c0_57, %c0_58] : memref<2x32x64xbf16, #tpu.memory_space<vmem>>, vector<1x32x64xbf16>
    %184 = vector.shape_cast %183 : vector<1x32x64xbf16> to vector<32x64xbf16>
    %185 = arith.truncf %182 : vector<16x32xf32> to vector<16x32xbf16>
    %cst_59 = arith.constant dense<0.000000e+00> : vector<16x64xf32>
    %186 = tpu.matmul %185, %184, %cst_59 {dimension_numbers = #tpu.dot_dimension_numbers<[1], [0], [0], [1], [0, 0, 1, 1], [], []>} : vector<16x32xbf16>, vector<32x64xbf16>, vector<16x64xf32> -> vector<16x64xf32>
    %c7 = arith.constant 7 : index
    %c0_60 = arith.constant 0 : index
    %187 = vector.load %arg3[%c7, %c0_60] : memref<19x128xf32, #tpu.memory_space<vmem>>, vector<1x64xf32>
    %188 = vector.broadcast %187 : vector<1x64xf32> to vector<16x64xf32>
    %189 = arith.addf %186, %188 : vector<16x64xf32>
    %190 = arith.mulf %189, %189 : vector<16x64xf32>
    %191 = arith.mulf %189, %190 : vector<16x64xf32>
    %cst_61 = arith.constant 4.471500e-02 : f32
    %192 = vector.broadcast %cst_61 : f32 to vector<16x64xf32>
    %193 = arith.mulf %192, %191 : vector<16x64xf32>
    %194 = arith.addf %189, %193 : vector<16x64xf32>
    %cst_62 = arith.constant 0.797884583 : f32
    %195 = vector.broadcast %cst_62 : f32 to vector<16x64xf32>
    %196 = arith.mulf %195, %194 : vector<16x64xf32>
    %197 = math.tanh %196 : vector<16x64xf32>
    %cst_63 = arith.constant 1.000000e+00 : f32
    %198 = vector.broadcast %cst_63 : f32 to vector<16x64xf32>
    %199 = arith.addf %198, %197 : vector<16x64xf32>
    %cst_64 = arith.constant 5.000000e-01 : f32
    %200 = vector.broadcast %cst_64 : f32 to vector<16x64xf32>
    %201 = arith.mulf %200, %199 : vector<16x64xf32>
    %202 = arith.mulf %189, %201 : vector<16x64xf32>
    %c0_65 = arith.constant 0 : index
    %c0_66 = arith.constant 0 : index
    %c0_67 = arith.constant 0 : index
    %203 = vector.load %arg7[%c0_65, %c0_66, %c0_67] : memref<2x64x32xbf16, #tpu.memory_space<vmem>>, vector<1x64x32xbf16>
    %204 = vector.shape_cast %203 : vector<1x64x32xbf16> to vector<64x32xbf16>
    %205 = arith.truncf %202 : vector<16x64xf32> to vector<16x64xbf16>
    %cst_68 = arith.constant dense<0.000000e+00> : vector<16x32xf32>
    %206 = tpu.matmul %205, %204, %cst_68 {dimension_numbers = #tpu.dot_dimension_numbers<[1], [0], [0], [1], [0, 0, 1, 1], [], []>} : vector<16x64xbf16>, vector<64x32xbf16>, vector<16x32xf32> -> vector<16x32xf32>
    %c8 = arith.constant 8 : index
    %c0_69 = arith.constant 0 : index
    %207 = vector.load %arg3[%c8, %c0_69] : memref<19x128xf32, #tpu.memory_space<vmem>>, vector<1x32xf32>
    %208 = vector.broadcast %207 : vector<1x32xf32> to vector<16x32xf32>
    %209 = arith.addf %206, %208 : vector<16x32xf32>
    %210 = arith.addf %182, %209 : vector<16x32xf32>
    %c9 = arith.constant 9 : index
    %c0_70 = arith.constant 0 : index
    %211 = vector.load %arg3[%c9, %c0_70] : memref<19x128xf32, #tpu.memory_space<vmem>>, vector<1x32xf32>
    %c10 = arith.constant 10 : index
    %c0_71 = arith.constant 0 : index
    %212 = vector.load %arg3[%c10, %c0_71] : memref<19x128xf32, #tpu.memory_space<vmem>>, vector<1x32xf32>
    %cst_72 = arith.constant dense<0.000000e+00> : vector<16xf32>
    %213 = vector.multi_reduction <add>, %210, %cst_72 [1] : vector<16x32xf32> to vector<16xf32>
    %214 = vector.shape_cast %213 : vector<16xf32> to vector<16x1xf32>
    %cst_73 = arith.constant 3.200000e+01 : f32
    %215 = vector.broadcast %cst_73 : f32 to vector<16x1xf32>
    %216 = arith.divf %214, %215 : vector<16x1xf32>
    %217 = vector.broadcast %216 : vector<16x1xf32> to vector<16x32xf32>
    %218 = arith.subf %210, %217 : vector<16x32xf32>
    %219 = vector.broadcast %216 : vector<16x1xf32> to vector<16x32xf32>
    %220 = arith.subf %210, %219 : vector<16x32xf32>
    %221 = arith.mulf %218, %220 : vector<16x32xf32>
    %cst_74 = arith.constant dense<0.000000e+00> : vector<16xf32>
    %222 = vector.multi_reduction <add>, %221, %cst_74 [1] : vector<16x32xf32> to vector<16xf32>
    %223 = vector.shape_cast %222 : vector<16xf32> to vector<16x1xf32>
    %cst_75 = arith.constant 3.200000e+01 : f32
    %224 = vector.broadcast %cst_75 : f32 to vector<16x1xf32>
    %225 = arith.divf %223, %224 : vector<16x1xf32>
    %226 = vector.broadcast %216 : vector<16x1xf32> to vector<16x32xf32>
    %227 = arith.subf %210, %226 : vector<16x32xf32>
    %cst_76 = arith.constant 9.99999996E-13 : f32
    %228 = vector.broadcast %cst_76 : f32 to vector<16x1xf32>
    %229 = arith.addf %225, %228 : vector<16x1xf32>
    %230 = math.rsqrt %229 : vector<16x1xf32>
    %231 = vector.broadcast %230 : vector<16x1xf32> to vector<16x32xf32>
    %232 = arith.mulf %227, %231 : vector<16x32xf32>
    %233 = vector.broadcast %211 : vector<1x32xf32> to vector<16x32xf32>
    %234 = arith.mulf %232, %233 : vector<16x32xf32>
    %235 = vector.broadcast %212 : vector<1x32xf32> to vector<16x32xf32>
    %236 = arith.addf %234, %235 : vector<16x32xf32>
    %c1_77 = arith.constant 1 : index
    %c0_78 = arith.constant 0 : index
    %c0_79 = arith.constant 0 : index
    %237 = vector.load %arg4[%c1_77, %c0_78, %c0_79] : memref<2x32x96xbf16, #tpu.memory_space<vmem>>, vector<1x32x96xbf16>
    %238 = vector.shape_cast %237 : vector<1x32x96xbf16> to vector<32x96xbf16>
    %239 = arith.truncf %236 : vector<16x32xf32> to vector<16x32xbf16>
    %cst_80 = arith.constant dense<0.000000e+00> : vector<16x96xf32>
    %240 = tpu.matmul %239, %238, %cst_80 {dimension_numbers = #tpu.dot_dimension_numbers<[1], [0], [0], [1], [0, 0, 1, 1], [], []>} : vector<16x32xbf16>, vector<32x96xbf16>, vector<16x96xf32> -> vector<16x96xf32>
    %c11 = arith.constant 11 : index
    %c0_81 = arith.constant 0 : index
    %241 = vector.load %arg3[%c11, %c0_81] : memref<19x128xf32, #tpu.memory_space<vmem>>, vector<1x96xf32>
    %242 = vector.broadcast %241 : vector<1x96xf32> to vector<16x96xf32>
    %243 = arith.addf %240, %242 : vector<16x96xf32>
    %244 = vector.extract_strided_slice %243 {offsets = [0, 0], sizes = [16, 32], strides = [1, 1]} : vector<16x96xf32> to vector<16x32xf32>
    %245 = vector.shape_cast %244 : vector<16x32xf32> to vector<2x8x32xf32>
    %246 = arith.truncf %245 : vector<2x8x32xf32> to vector<2x8x32xbf16>
    %247 = vector.extract_strided_slice %243 {offsets = [0, 32], sizes = [16, 32], strides = [1, 1]} : vector<16x96xf32> to vector<16x32xf32>
    %248 = vector.shape_cast %247 : vector<16x32xf32> to vector<2x8x32xf32>
    %249 = arith.truncf %248 : vector<2x8x32xf32> to vector<2x8x32xbf16>
    %250 = vector.extract_strided_slice %243 {offsets = [0, 64], sizes = [16, 32], strides = [1, 1]} : vector<16x96xf32> to vector<16x32xf32>
    %251 = vector.shape_cast %250 : vector<16x32xf32> to vector<2x8x32xf32>
    %252 = arith.truncf %251 : vector<2x8x32xf32> to vector<2x8x32xbf16>
    %c1_82 = arith.constant 1 : index
    %c0_83 = arith.constant 0 : index
    %c0_84 = arith.constant 0 : index
    %253 = vector.load %arg5[%c1_82, %c0_83, %c0_84] : memref<2x32x32xbf16, #tpu.memory_space<vmem>>, vector<1x32x32xbf16>
    %254 = vector.shape_cast %253 : vector<1x32x32xbf16> to vector<32x32xbf16>
    %255 = vector.extract_strided_slice %246 {offsets = [0, 0, 0], sizes = [2, 8, 8], strides = [1, 1, 1]} : vector<2x8x32xbf16> to vector<2x8x8xbf16>
    %256 = vector.extract_strided_slice %249 {offsets = [0, 0, 0], sizes = [2, 8, 8], strides = [1, 1, 1]} : vector<2x8x32xbf16> to vector<2x8x8xbf16>
    "tpu.trace_start"() <{level = 10 : i32, message = "bqd,bkd->bqk"}> : () -> ()
    %cst_85 = arith.constant dense<0.000000e+00> : vector<2x8x8xf32>
    %257 = tpu.matmul %255, %256, %cst_85 {dimension_numbers = #tpu.dot_dimension_numbers<[2], [2], [1], [1], [0, 0, 0, 1, 1, 1], [0], [0]>} : vector<2x8x8xbf16>, vector<2x8x8xbf16>, vector<2x8x8xf32> -> vector<2x8x8xf32>
    "tpu.trace_stop"() : () -> ()
    %cst_86 = arith.constant 0.353553385 : f32
    %258 = vector.broadcast %cst_86 : f32 to vector<2x8x8xf32>
    %259 = arith.mulf %257, %258 : vector<2x8x8xf32>
    %260 = vector.broadcast %8 : vector<2x1x8xf32> to vector<2x8x8xf32>
    %261 = arith.addf %259, %260 : vector<2x8x8xf32>
    %cst_87 = arith.constant dense<0xFF800000> : vector<2x8xf32>
    %262 = vector.multi_reduction <maximumf>, %261, %cst_87 [2] : vector<2x8x8xf32> to vector<2x8xf32>
    %263 = vector.shape_cast %262 : vector<2x8xf32> to vector<2x8x1xf32>
    %264 = vector.broadcast %263 : vector<2x8x1xf32> to vector<2x8x8xf32>
    %265 = arith.subf %261, %264 : vector<2x8x8xf32>
    %266 = math.exp %265 : vector<2x8x8xf32>
    %cst_88 = arith.constant dense<0.000000e+00> : vector<2x8xf32>
    %267 = vector.multi_reduction <add>, %266, %cst_88 [2] : vector<2x8x8xf32> to vector<2x8xf32>
    %268 = vector.shape_cast %267 : vector<2x8xf32> to vector<2x8x1xf32>
    %269 = tpu.reciprocal %268 {approx = true} : vector<2x8x1xf32> -> vector<2x8x1xf32>
    %270 = vector.broadcast %269 : vector<2x8x1xf32> to vector<2x8x8xf32>
    %271 = arith.mulf %266, %270 : vector<2x8x8xf32>
    %272 = arith.truncf %271 : vector<2x8x8xf32> to vector<2x8x8xbf16>
    %273 = vector.extract_strided_slice %252 {offsets = [0, 0, 0], sizes = [2, 8, 8], strides = [1, 1, 1]} : vector<2x8x32xbf16> to vector<2x8x8xbf16>
    "tpu.trace_start"() <{level = 10 : i32, message = "bqk,bkd->bqd"}> : () -> ()
    %cst_89 = arith.constant dense<0.000000e+00> : vector<2x8x8xf32>
    %274 = tpu.matmul %272, %273, %cst_89 {dimension_numbers = #tpu.dot_dimension_numbers<[2], [1], [1], [2], [0, 0, 0, 1, 1, 2], [0], [0]>} : vector<2x8x8xbf16>, vector<2x8x8xbf16>, vector<2x8x8xf32> -> vector<2x8x8xf32>
    "tpu.trace_stop"() : () -> ()
    %275 = vector.shape_cast %274 : vector<2x8x8xf32> to vector<16x8xf32>
    %276 = arith.truncf %275 : vector<16x8xf32> to vector<16x8xbf16>
    %277 = vector.extract_strided_slice %254 {offsets = [0, 0], sizes = [8, 32], strides = [1, 1]} : vector<32x32xbf16> to vector<8x32xbf16>
    %cst_90 = arith.constant dense<0.000000e+00> : vector<16x32xf32>
    %278 = tpu.matmul %276, %277, %cst_90 {dimension_numbers = #tpu.dot_dimension_numbers<[1], [0], [0], [1], [0, 0, 1, 1], [], []>} : vector<16x8xbf16>, vector<8x32xbf16>, vector<16x32xf32> -> vector<16x32xf32>
    %279 = vector.extract_strided_slice %246 {offsets = [0, 0, 8], sizes = [2, 8, 8], strides = [1, 1, 1]} : vector<2x8x32xbf16> to vector<2x8x8xbf16>
    %280 = vector.extract_strided_slice %249 {offsets = [0, 0, 8], sizes = [2, 8, 8], strides = [1, 1, 1]} : vector<2x8x32xbf16> to vector<2x8x8xbf16>
    "tpu.trace_start"() <{level = 10 : i32, message = "bqd,bkd->bqk"}> : () -> ()
    %cst_91 = arith.constant dense<0.000000e+00> : vector<2x8x8xf32>
    %281 = tpu.matmul %279, %280, %cst_91 {dimension_numbers = #tpu.dot_dimension_numbers<[2], [2], [1], [1], [0, 0, 0, 1, 1, 1], [0], [0]>} : vector<2x8x8xbf16>, vector<2x8x8xbf16>, vector<2x8x8xf32> -> vector<2x8x8xf32>
    "tpu.trace_stop"() : () -> ()
    %cst_92 = arith.constant 0.353553385 : f32
    %282 = vector.broadcast %cst_92 : f32 to vector<2x8x8xf32>
    %283 = arith.mulf %281, %282 : vector<2x8x8xf32>
    %284 = vector.broadcast %8 : vector<2x1x8xf32> to vector<2x8x8xf32>
    %285 = arith.addf %283, %284 : vector<2x8x8xf32>
    %cst_93 = arith.constant dense<0xFF800000> : vector<2x8xf32>
    %286 = vector.multi_reduction <maximumf>, %285, %cst_93 [2] : vector<2x8x8xf32> to vector<2x8xf32>
    %287 = vector.shape_cast %286 : vector<2x8xf32> to vector<2x8x1xf32>
    %288 = vector.broadcast %287 : vector<2x8x1xf32> to vector<2x8x8xf32>
    %289 = arith.subf %285, %288 : vector<2x8x8xf32>
    %290 = math.exp %289 : vector<2x8x8xf32>
    %cst_94 = arith.constant dense<0.000000e+00> : vector<2x8xf32>
    %291 = vector.multi_reduction <add>, %290, %cst_94 [2] : vector<2x8x8xf32> to vector<2x8xf32>
    %292 = vector.shape_cast %291 : vector<2x8xf32> to vector<2x8x1xf32>
    %293 = tpu.reciprocal %292 {approx = true} : vector<2x8x1xf32> -> vector<2x8x1xf32>
    %294 = vector.broadcast %293 : vector<2x8x1xf32> to vector<2x8x8xf32>
    %295 = arith.mulf %290, %294 : vector<2x8x8xf32>
    %296 = arith.truncf %295 : vector<2x8x8xf32> to vector<2x8x8xbf16>
    %297 = vector.extract_strided_slice %252 {offsets = [0, 0, 8], sizes = [2, 8, 8], strides = [1, 1, 1]} : vector<2x8x32xbf16> to vector<2x8x8xbf16>
    "tpu.trace_start"() <{level = 10 : i32, message = "bqk,bkd->bqd"}> : () -> ()
    %cst_95 = arith.constant dense<0.000000e+00> : vector<2x8x8xf32>
    %298 = tpu.matmul %296, %297, %cst_95 {dimension_numbers = #tpu.dot_dimension_numbers<[2], [1], [1], [2], [0, 0, 0, 1, 1, 2], [0], [0]>} : vector<2x8x8xbf16>, vector<2x8x8xbf16>, vector<2x8x8xf32> -> vector<2x8x8xf32>
    "tpu.trace_stop"() : () -> ()
    %299 = vector.shape_cast %298 : vector<2x8x8xf32> to vector<16x8xf32>
    %300 = arith.truncf %299 : vector<16x8xf32> to vector<16x8xbf16>
    %301 = vector.extract_strided_slice %254 {offsets = [8, 0], sizes = [8, 32], strides = [1, 1]} : vector<32x32xbf16> to vector<8x32xbf16>
    %cst_96 = arith.constant dense<0.000000e+00> : vector<16x32xf32>
    %302 = tpu.matmul %300, %301, %cst_96 {dimension_numbers = #tpu.dot_dimension_numbers<[1], [0], [0], [1], [0, 0, 1, 1], [], []>} : vector<16x8xbf16>, vector<8x32xbf16>, vector<16x32xf32> -> vector<16x32xf32>
    %303 = arith.addf %278, %302 : vector<16x32xf32>
    %304 = vector.extract_strided_slice %246 {offsets = [0, 0, 16], sizes = [2, 8, 8], strides = [1, 1, 1]} : vector<2x8x32xbf16> to vector<2x8x8xbf16>
    %305 = vector.extract_strided_slice %249 {offsets = [0, 0, 16], sizes = [2, 8, 8], strides = [1, 1, 1]} : vector<2x8x32xbf16> to vector<2x8x8xbf16>
    "tpu.trace_start"() <{level = 10 : i32, message = "bqd,bkd->bqk"}> : () -> ()
    %cst_97 = arith.constant dense<0.000000e+00> : vector<2x8x8xf32>
    %306 = tpu.matmul %304, %305, %cst_97 {dimension_numbers = #tpu.dot_dimension_numbers<[2], [2], [1], [1], [0, 0, 0, 1, 1, 1], [0], [0]>} : vector<2x8x8xbf16>, vector<2x8x8xbf16>, vector<2x8x8xf32> -> vector<2x8x8xf32>
    "tpu.trace_stop"() : () -> ()
    %cst_98 = arith.constant 0.353553385 : f32
    %307 = vector.broadcast %cst_98 : f32 to vector<2x8x8xf32>
    %308 = arith.mulf %306, %307 : vector<2x8x8xf32>
    %309 = vector.broadcast %8 : vector<2x1x8xf32> to vector<2x8x8xf32>
    %310 = arith.addf %308, %309 : vector<2x8x8xf32>
    %cst_99 = arith.constant dense<0xFF800000> : vector<2x8xf32>
    %311 = vector.multi_reduction <maximumf>, %310, %cst_99 [2] : vector<2x8x8xf32> to vector<2x8xf32>
    %312 = vector.shape_cast %311 : vector<2x8xf32> to vector<2x8x1xf32>
    %313 = vector.broadcast %312 : vector<2x8x1xf32> to vector<2x8x8xf32>
    %314 = arith.subf %310, %313 : vector<2x8x8xf32>
    %315 = math.exp %314 : vector<2x8x8xf32>
    %cst_100 = arith.constant dense<0.000000e+00> : vector<2x8xf32>
    %316 = vector.multi_reduction <add>, %315, %cst_100 [2] : vector<2x8x8xf32> to vector<2x8xf32>
    %317 = vector.shape_cast %316 : vector<2x8xf32> to vector<2x8x1xf32>
    %318 = tpu.reciprocal %317 {approx = true} : vector<2x8x1xf32> -> vector<2x8x1xf32>
    %319 = vector.broadcast %318 : vector<2x8x1xf32> to vector<2x8x8xf32>
    %320 = arith.mulf %315, %319 : vector<2x8x8xf32>
    %321 = arith.truncf %320 : vector<2x8x8xf32> to vector<2x8x8xbf16>
    %322 = vector.extract_strided_slice %252 {offsets = [0, 0, 16], sizes = [2, 8, 8], strides = [1, 1, 1]} : vector<2x8x32xbf16> to vector<2x8x8xbf16>
    "tpu.trace_start"() <{level = 10 : i32, message = "bqk,bkd->bqd"}> : () -> ()
    %cst_101 = arith.constant dense<0.000000e+00> : vector<2x8x8xf32>
    %323 = tpu.matmul %321, %322, %cst_101 {dimension_numbers = #tpu.dot_dimension_numbers<[2], [1], [1], [2], [0, 0, 0, 1, 1, 2], [0], [0]>} : vector<2x8x8xbf16>, vector<2x8x8xbf16>, vector<2x8x8xf32> -> vector<2x8x8xf32>
    "tpu.trace_stop"() : () -> ()
    %324 = vector.shape_cast %323 : vector<2x8x8xf32> to vector<16x8xf32>
    %325 = arith.truncf %324 : vector<16x8xf32> to vector<16x8xbf16>
    %326 = vector.extract_strided_slice %254 {offsets = [16, 0], sizes = [8, 32], strides = [1, 1]} : vector<32x32xbf16> to vector<8x32xbf16>
    %cst_102 = arith.constant dense<0.000000e+00> : vector<16x32xf32>
    %327 = tpu.matmul %325, %326, %cst_102 {dimension_numbers = #tpu.dot_dimension_numbers<[1], [0], [0], [1], [0, 0, 1, 1], [], []>} : vector<16x8xbf16>, vector<8x32xbf16>, vector<16x32xf32> -> vector<16x32xf32>
    %328 = arith.addf %303, %327 : vector<16x32xf32>
    %329 = vector.extract_strided_slice %246 {offsets = [0, 0, 24], sizes = [2, 8, 8], strides = [1, 1, 1]} : vector<2x8x32xbf16> to vector<2x8x8xbf16>
    %330 = vector.extract_strided_slice %249 {offsets = [0, 0, 24], sizes = [2, 8, 8], strides = [1, 1, 1]} : vector<2x8x32xbf16> to vector<2x8x8xbf16>
    "tpu.trace_start"() <{level = 10 : i32, message = "bqd,bkd->bqk"}> : () -> ()
    %cst_103 = arith.constant dense<0.000000e+00> : vector<2x8x8xf32>
    %331 = tpu.matmul %329, %330, %cst_103 {dimension_numbers = #tpu.dot_dimension_numbers<[2], [2], [1], [1], [0, 0, 0, 1, 1, 1], [0], [0]>} : vector<2x8x8xbf16>, vector<2x8x8xbf16>, vector<2x8x8xf32> -> vector<2x8x8xf32>
    "tpu.trace_stop"() : () -> ()
    %cst_104 = arith.constant 0.353553385 : f32
    %332 = vector.broadcast %cst_104 : f32 to vector<2x8x8xf32>
    %333 = arith.mulf %331, %332 : vector<2x8x8xf32>
    %334 = vector.broadcast %8 : vector<2x1x8xf32> to vector<2x8x8xf32>
    %335 = arith.addf %333, %334 : vector<2x8x8xf32>
    %cst_105 = arith.constant dense<0xFF800000> : vector<2x8xf32>
    %336 = vector.multi_reduction <maximumf>, %335, %cst_105 [2] : vector<2x8x8xf32> to vector<2x8xf32>
    %337 = vector.shape_cast %336 : vector<2x8xf32> to vector<2x8x1xf32>
    %338 = vector.broadcast %337 : vector<2x8x1xf32> to vector<2x8x8xf32>
    %339 = arith.subf %335, %338 : vector<2x8x8xf32>
    %340 = math.exp %339 : vector<2x8x8xf32>
    %cst_106 = arith.constant dense<0.000000e+00> : vector<2x8xf32>
    %341 = vector.multi_reduction <add>, %340, %cst_106 [2] : vector<2x8x8xf32> to vector<2x8xf32>
    %342 = vector.shape_cast %341 : vector<2x8xf32> to vector<2x8x1xf32>
    %343 = tpu.reciprocal %342 {approx = true} : vector<2x8x1xf32> -> vector<2x8x1xf32>
    %344 = vector.broadcast %343 : vector<2x8x1xf32> to vector<2x8x8xf32>
    %345 = arith.mulf %340, %344 : vector<2x8x8xf32>
    %346 = arith.truncf %345 : vector<2x8x8xf32> to vector<2x8x8xbf16>
    %347 = vector.extract_strided_slice %252 {offsets = [0, 0, 24], sizes = [2, 8, 8], strides = [1, 1, 1]} : vector<2x8x32xbf16> to vector<2x8x8xbf16>
    "tpu.trace_start"() <{level = 10 : i32, message = "bqk,bkd->bqd"}> : () -> ()
    %cst_107 = arith.constant dense<0.000000e+00> : vector<2x8x8xf32>
    %348 = tpu.matmul %346, %347, %cst_107 {dimension_numbers = #tpu.dot_dimension_numbers<[2], [1], [1], [2], [0, 0, 0, 1, 1, 2], [0], [0]>} : vector<2x8x8xbf16>, vector<2x8x8xbf16>, vector<2x8x8xf32> -> vector<2x8x8xf32>
    "tpu.trace_stop"() : () -> ()
    %349 = vector.shape_cast %348 : vector<2x8x8xf32> to vector<16x8xf32>
    %350 = arith.truncf %349 : vector<16x8xf32> to vector<16x8xbf16>
    %351 = vector.extract_strided_slice %254 {offsets = [24, 0], sizes = [8, 32], strides = [1, 1]} : vector<32x32xbf16> to vector<8x32xbf16>
    %cst_108 = arith.constant dense<0.000000e+00> : vector<16x32xf32>
    %352 = tpu.matmul %350, %351, %cst_108 {dimension_numbers = #tpu.dot_dimension_numbers<[1], [0], [0], [1], [0, 0, 1, 1], [], []>} : vector<16x8xbf16>, vector<8x32xbf16>, vector<16x32xf32> -> vector<16x32xf32>
    %353 = arith.addf %328, %352 : vector<16x32xf32>
    %c12 = arith.constant 12 : index
    %c0_109 = arith.constant 0 : index
    %354 = vector.load %arg3[%c12, %c0_109] : memref<19x128xf32, #tpu.memory_space<vmem>>, vector<1x32xf32>
    %355 = vector.broadcast %354 : vector<1x32xf32> to vector<16x32xf32>
    %356 = arith.addf %353, %355 : vector<16x32xf32>
    %357 = arith.addf %236, %356 : vector<16x32xf32>
    %c13 = arith.constant 13 : index
    %c0_110 = arith.constant 0 : index
    %358 = vector.load %arg3[%c13, %c0_110] : memref<19x128xf32, #tpu.memory_space<vmem>>, vector<1x32xf32>
    %c14 = arith.constant 14 : index
    %c0_111 = arith.constant 0 : index
    %359 = vector.load %arg3[%c14, %c0_111] : memref<19x128xf32, #tpu.memory_space<vmem>>, vector<1x32xf32>
    %cst_112 = arith.constant dense<0.000000e+00> : vector<16xf32>
    %360 = vector.multi_reduction <add>, %357, %cst_112 [1] : vector<16x32xf32> to vector<16xf32>
    %361 = vector.shape_cast %360 : vector<16xf32> to vector<16x1xf32>
    %cst_113 = arith.constant 3.200000e+01 : f32
    %362 = vector.broadcast %cst_113 : f32 to vector<16x1xf32>
    %363 = arith.divf %361, %362 : vector<16x1xf32>
    %364 = vector.broadcast %363 : vector<16x1xf32> to vector<16x32xf32>
    %365 = arith.subf %357, %364 : vector<16x32xf32>
    %366 = vector.broadcast %363 : vector<16x1xf32> to vector<16x32xf32>
    %367 = arith.subf %357, %366 : vector<16x32xf32>
    %368 = arith.mulf %365, %367 : vector<16x32xf32>
    %cst_114 = arith.constant dense<0.000000e+00> : vector<16xf32>
    %369 = vector.multi_reduction <add>, %368, %cst_114 [1] : vector<16x32xf32> to vector<16xf32>
    %370 = vector.shape_cast %369 : vector<16xf32> to vector<16x1xf32>
    %cst_115 = arith.constant 3.200000e+01 : f32
    %371 = vector.broadcast %cst_115 : f32 to vector<16x1xf32>
    %372 = arith.divf %370, %371 : vector<16x1xf32>
    %373 = vector.broadcast %363 : vector<16x1xf32> to vector<16x32xf32>
    %374 = arith.subf %357, %373 : vector<16x32xf32>
    %cst_116 = arith.constant 9.99999996E-13 : f32
    %375 = vector.broadcast %cst_116 : f32 to vector<16x1xf32>
    %376 = arith.addf %372, %375 : vector<16x1xf32>
    %377 = math.rsqrt %376 : vector<16x1xf32>
    %378 = vector.broadcast %377 : vector<16x1xf32> to vector<16x32xf32>
    %379 = arith.mulf %374, %378 : vector<16x32xf32>
    %380 = vector.broadcast %358 : vector<1x32xf32> to vector<16x32xf32>
    %381 = arith.mulf %379, %380 : vector<16x32xf32>
    %382 = vector.broadcast %359 : vector<1x32xf32> to vector<16x32xf32>
    %383 = arith.addf %381, %382 : vector<16x32xf32>
    %c1_117 = arith.constant 1 : index
    %c0_118 = arith.constant 0 : index
    %c0_119 = arith.constant 0 : index
    %384 = vector.load %arg6[%c1_117, %c0_118, %c0_119] : memref<2x32x64xbf16, #tpu.memory_space<vmem>>, vector<1x32x64xbf16>
    %385 = vector.shape_cast %384 : vector<1x32x64xbf16> to vector<32x64xbf16>
    %386 = arith.truncf %383 : vector<16x32xf32> to vector<16x32xbf16>
    %cst_120 = arith.constant dense<0.000000e+00> : vector<16x64xf32>
    %387 = tpu.matmul %386, %385, %cst_120 {dimension_numbers = #tpu.dot_dimension_numbers<[1], [0], [0], [1], [0, 0, 1, 1], [], []>} : vector<16x32xbf16>, vector<32x64xbf16>, vector<16x64xf32> -> vector<16x64xf32>
    %c15 = arith.constant 15 : index
    %c0_121 = arith.constant 0 : index
    %388 = vector.load %arg3[%c15, %c0_121] : memref<19x128xf32, #tpu.memory_space<vmem>>, vector<1x64xf32>
    %389 = vector.broadcast %388 : vector<1x64xf32> to vector<16x64xf32>
    %390 = arith.addf %387, %389 : vector<16x64xf32>
    %391 = arith.mulf %390, %390 : vector<16x64xf32>
    %392 = arith.mulf %390, %391 : vector<16x64xf32>
    %cst_122 = arith.constant 4.471500e-02 : f32
    %393 = vector.broadcast %cst_122 : f32 to vector<16x64xf32>
    %394 = arith.mulf %393, %392 : vector<16x64xf32>
    %395 = arith.addf %390, %394 : vector<16x64xf32>
    %cst_123 = arith.constant 0.797884583 : f32
    %396 = vector.broadcast %cst_123 : f32 to vector<16x64xf32>
    %397 = arith.mulf %396, %395 : vector<16x64xf32>
    %398 = math.tanh %397 : vector<16x64xf32>
    %cst_124 = arith.constant 1.000000e+00 : f32
    %399 = vector.broadcast %cst_124 : f32 to vector<16x64xf32>
    %400 = arith.addf %399, %398 : vector<16x64xf32>
    %cst_125 = arith.constant 5.000000e-01 : f32
    %401 = vector.broadcast %cst_125 : f32 to vector<16x64xf32>
    %402 = arith.mulf %401, %400 : vector<16x64xf32>
    %403 = arith.mulf %390, %402 : vector<16x64xf32>
    %c1_126 = arith.constant 1 : index
    %c0_127 = arith.constant 0 : index
    %c0_128 = arith.constant 0 : index
    %404 = vector.load %arg7[%c1_126, %c0_127, %c0_128] : memref<2x64x32xbf16, #tpu.memory_space<vmem>>, vector<1x64x32xbf16>
    %405 = vector.shape_cast %404 : vector<1x64x32xbf16> to vector<64x32xbf16>
    %406 = arith.truncf %403 : vector<16x64xf32> to vector<16x64xbf16>
    %cst_129 = arith.constant dense<0.000000e+00> : vector<16x32xf32>
    %407 = tpu.matmul %406, %405, %cst_129 {dimension_numbers = #tpu.dot_dimension_numbers<[1], [0], [0], [1], [0, 0, 1, 1], [], []>} : vector<16x64xbf16>, vector<64x32xbf16>, vector<16x32xf32> -> vector<16x32xf32>
    %c16 = arith.constant 16 : index
    %c0_130 = arith.constant 0 : index
    %408 = vector.load %arg3[%c16, %c0_130] : memref<19x128xf32, #tpu.memory_space<vmem>>, vector<1x32xf32>
    %409 = vector.broadcast %408 : vector<1x32xf32> to vector<16x32xf32>
    %410 = arith.addf %407, %409 : vector<16x32xf32>
    %411 = arith.addf %383, %410 : vector<16x32xf32>
    %c17 = arith.constant 17 : index
    %c0_131 = arith.constant 0 : index
    %412 = vector.load %arg3[%c17, %c0_131] : memref<19x128xf32, #tpu.memory_space<vmem>>, vector<1x32xf32>
    %c18 = arith.constant 18 : index
    %c0_132 = arith.constant 0 : index
    %413 = vector.load %arg3[%c18, %c0_132] : memref<19x128xf32, #tpu.memory_space<vmem>>, vector<1x32xf32>
    %cst_133 = arith.constant dense<0.000000e+00> : vector<16xf32>
    %414 = vector.multi_reduction <add>, %411, %cst_133 [1] : vector<16x32xf32> to vector<16xf32>
    %415 = vector.shape_cast %414 : vector<16xf32> to vector<16x1xf32>
    %cst_134 = arith.constant 3.200000e+01 : f32
    %416 = vector.broadcast %cst_134 : f32 to vector<16x1xf32>
    %417 = arith.divf %415, %416 : vector<16x1xf32>
    %418 = vector.broadcast %417 : vector<16x1xf32> to vector<16x32xf32>
    %419 = arith.subf %411, %418 : vector<16x32xf32>
    %420 = vector.broadcast %417 : vector<16x1xf32> to vector<16x32xf32>
    %421 = arith.subf %411, %420 : vector<16x32xf32>
    %422 = arith.mulf %419, %421 : vector<16x32xf32>
    %cst_135 = arith.constant dense<0.000000e+00> : vector<16xf32>
    %423 = vector.multi_reduction <add>, %422, %cst_135 [1] : vector<16x32xf32> to vector<16xf32>
    %424 = vector.shape_cast %423 : vector<16xf32> to vector<16x1xf32>
    %cst_136 = arith.constant 3.200000e+01 : f32
    %425 = vector.broadcast %cst_136 : f32 to vector<16x1xf32>
    %426 = arith.divf %424, %425 : vector<16x1xf32>
    %427 = vector.broadcast %417 : vector<16x1xf32> to vector<16x32xf32>
    %428 = arith.subf %411, %427 : vector<16x32xf32>
    %cst_137 = arith.constant 9.99999996E-13 : f32
    %429 = vector.broadcast %cst_137 : f32 to vector<16x1xf32>
    %430 = arith.addf %426, %429 : vector<16x1xf32>
    %431 = math.rsqrt %430 : vector<16x1xf32>
    %432 = vector.broadcast %431 : vector<16x1xf32> to vector<16x32xf32>
    %433 = arith.mulf %428, %432 : vector<16x32xf32>
    %434 = vector.broadcast %412 : vector<1x32xf32> to vector<16x32xf32>
    %435 = arith.mulf %433, %434 : vector<16x32xf32>
    %436 = vector.broadcast %413 : vector<1x32xf32> to vector<16x32xf32>
    %437 = arith.addf %435, %436 : vector<16x32xf32>
    %c0_138 = arith.constant 0 : index
    %c0_139 = arith.constant 0 : index
    %438 = vector.load %arg8[%c0_138, %c0_139] : memref<32x128xbf16, #tpu.memory_space<vmem>>, vector<32x128xbf16>
    %439 = arith.truncf %437 : vector<16x32xf32> to vector<16x32xbf16>
    %cst_140 = arith.constant dense<0.000000e+00> : vector<16x128xf32>
    %440 = tpu.matmul %439, %438, %cst_140 {dimension_numbers = #tpu.dot_dimension_numbers<[1], [0], [0], [1], [0, 0, 1, 1], [], []>} : vector<16x32xbf16>, vector<32x128xbf16>, vector<16x128xf32> -> vector<16x128xf32>
    %c2 = arith.constant 2 : index
    %c0_141 = arith.constant 0 : index
    %441 = vector.load %arg3[%c2, %c0_141] : memref<19x128xf32, #tpu.memory_space<vmem>>, vector<1x128xf32>
    %442 = vector.broadcast %441 : vector<1x128xf32> to vector<16x128xf32>
    %443 = arith.addf %440, %442 : vector<16x128xf32>
    %444 = tpu.iota {dimensions = array<i32: 1>} : vector<16x128xi32>
    %c5_i32 = arith.constant 5 : i32
    %445 = vector.broadcast %c5_i32 : i32 to vector<16x128xi32>
    %446 = arith.cmpi slt, %444, %445 : vector<16x128xi32>
    %cst_142 = arith.constant -1.000000e+30 : f32
    %447 = vector.broadcast %cst_142 : f32 to vector<16x128xf32>
    %448 = arith.select %446, %443, %447 : vector<16x128xi1>, vector<16x128xf32>
    %cst_143 = arith.constant dense<0xFF800000> : vector<16xf32>
    %449 = vector.multi_reduction <maximumf>, %448, %cst_143 [1] : vector<16x128xf32> to vector<16xf32>
    %450 = vector.shape_cast %449 : vector<16xf32> to vector<16x1xf32>
    %451 = vector.broadcast %450 : vector<16x1xf32> to vector<16x128xf32>
    %452 = arith.subf %448, %451 : vector<16x128xf32>
    %453 = math.exp %452 : vector<16x128xf32>
    %cst_144 = arith.constant 0.000000e+00 : f32
    %454 = vector.broadcast %cst_144 : f32 to vector<16x128xf32>
    %455 = arith.select %446, %453, %454 : vector<16x128xi1>, vector<16x128xf32>
    %cst_145 = arith.constant dense<0.000000e+00> : vector<16xf32>
    %456 = vector.multi_reduction <add>, %455, %cst_145 [1] : vector<16x128xf32> to vector<16xf32>
    %457 = vector.shape_cast %456 : vector<16xf32> to vector<16x1xf32>
    %458 = math.log %457 : vector<16x1xf32>
    %459 = vector.broadcast %2 : vector<16x1xi32> to vector<16x128xi32>
    %460 = arith.cmpi eq, %444, %459 : vector<16x128xi32>
    %461 = arith.extui %460 : vector<16x128xi1> to vector<16x128xi32>
    %462 = arith.sitofp %461 : vector<16x128xi32> to vector<16x128xf32>
    %463 = arith.mulf %452, %462 : vector<16x128xf32>
    %cst_146 = arith.constant dense<0.000000e+00> : vector<16xf32>
    %464 = vector.multi_reduction <add>, %463, %cst_146 [1] : vector<16x128xf32> to vector<16xf32>
    %465 = vector.shape_cast %464 : vector<16xf32> to vector<16x1xf32>
    %466 = arith.subf %458, %465 : vector<16x1xf32>
    %467 = arith.mulf %466, %0 : vector<16x1xf32>
    %cst_147 = arith.constant dense<0.000000e+00> : vector<1xf32>
    %468 = vector.multi_reduction <add>, %467, %cst_147 [0] : vector<16x1xf32> to vector<1xf32>
    %469 = vector.shape_cast %468 : vector<1xf32> to vector<1x1xf32>
    %cst_148 = arith.constant dense<0.000000e+00> : vector<1xf32>
    %470 = vector.multi_reduction <add>, %0, %cst_148 [0] : vector<16x1xf32> to vector<1xf32>
    %471 = vector.shape_cast %470 : vector<1xf32> to vector<1x1xf32>
    %cst_149 = arith.constant 1.000000e+00 : f32
    %472 = vector.broadcast %cst_149 : f32 to vector<1x1xf32>
    %473 = arith.maximumf %471, %472 : vector<1x1xf32>
    %474 = arith.divf %469, %473 : vector<1x1xf32>
    %c5_i32_150 = arith.constant 5 : i32
    %475 = vector.broadcast %c5_i32_150 : i32 to vector<16x128xi32>
    %476 = arith.cmpi eq, %444, %475 : vector<16x128xi32>
    %477 = vector.shape_cast %474 : vector<1x1xf32> to vector<1x1xf32>
    %478 = vector.broadcast %477 : vector<1x1xf32> to vector<16x128xf32>
    %479 = arith.select %476, %478, %443 : vector<16x128xi1>, vector<16x128xf32>
    %c0_151 = arith.constant 0 : index
    %c0_152 = arith.constant 0 : index
    %480 = vector.load %arg9[%c0_151, %c0_152] : memref<16x128xf32, #tpu.memory_space<vmem>>, vector<16x128xf32>
    tpu.vector_store %arg9[%c0_151, %c0_152], %479 {strides = array<i32>} : memref<16x128xf32, #tpu.memory_space<vmem>>, vector<16x128xf32>,
    return
  }
}

</mosaic_0001>

<bundles_post_ra>
// kernel: bert_token_classification_forward.1
= control target key start
LH: loop header
LB: loop body
LE: loop exit
PB: predicated region body
PF: predicated region fallthrough
CT: control target
= control target key end

     0   :  { %vm67_vm0 = vcmask 261120   ;;  %v3770_v14 = vmov 0.0   ;;  %vm3771_vm1 = vmmov 0   ;;  %s3772_s22 = smov 96   ;;  %vm182_vm2 = vcmask 64512   ;;  %s3775_s25 = smov 88   ;;  %s4497_s0 = inlined_call_operand.vmem [shape: f32[16,32], index: 0, kind: input, shape index: {}]   ;;  %s4498_s4 = inlined_call_operand.vmem [shape: bf16[2,32,96], index: 4, kind: input, shape index: {}]   ;;  %s4499_s3 = inlined_call_operand.vmem [shape: f32[19,128], index: 3, kind: input, shape index: {}]   ;;  %s4500_s1 = inlined_call_operand.vmem [shape: f32[2,8], index: 1, kind: input, shape index: {}]   ;;  %s4501_s5 = inlined_call_operand.vmem [shape: bf16[2,32,32], index: 5, kind: input, shape index: {}]   ;;  %s4502_s6 = inlined_call_operand.vmem [shape: bf16[2,32,64], index: 6, kind: input, shape index: {}]   ;;  %s4503_s7 = inlined_call_operand.vmem [shape: bf16[2,64,32], index: 7, kind: input, shape index: {}]   ;;  %s4504_s8 = inlined_call_operand.vmem [shape: bf16[32,128], index: 8, kind: input, shape index: {}]   ;;  %s4505_s2 = inlined_call_operand.vmem [shape: f32[16,2], index: 2, kind: input, shape index: {}]   ;;  %s4506_s9 = inlined_call_operand.vmem [shape: f32[16,128], index: 9, kind: output, shape index: {}]  }
   0x1   :  { %v63_v0 = vld [vmem:[%s4497_s0] sm:$0xff]  ;;  %v64_v1 = vld [vmem:[%s4497_s0 + $0x8] sm:$0xff]  ;;  %3322 = vmatprep.subr.bf16.mxu0 %v3770_v14  ;;  %3326 = vmatprep.mubr.msk.bf16.mxu0 %vm3771_vm1, %v3770_v14  ;;  %v3773_v47 = vmov 1966171168   ;;  %v44_v49 = vlaneseq  ;;  %vm321_vm3 = vcmask 1043456   ;;  %s3776_s26 = smov 120  }
   0x2   :  { %v68_v2 = vsel %vm67_vm0, %v63_v0, 0.0  ;;  %v71_v3 = vsel %vm67_vm0, %v64_v1, 0.0  ;;  %v3650_v15 = vld [vmem:[%s4498_s4 + $0x8] sm:$0xff]   ;;  %3330 = vmatprep.subr.bf16.mxu1 %v3770_v14  ;;  %3332 = vmatprep.mubr.msk.bf16.mxu1 %vm3771_vm1, %v3770_v14  ;;  %v3651_v16 = vld [vmem:[%s4498_s4] sm:$0xff]   ;;  %v42_v48 = vunpack.c.l.s4 %v3773_v47  ;;  %s3777_s27 = smov 56   ;;  %s3778_s28 = smov 80  }
   0x3   :  { %69 = vadd.xlane.f32.xlu0 %v68_v2  ;;  %3323 = vmatpush3.bf16.msra.mxu0 %v3650_v15  ;;  %v3111_v25 = vld [vmem:[%s4499_s3] ss:$0 sm:$0xff]  ;;  %v3112_v29 = vld [vmem:[%s4499_s3 + $0x1] ss:$0 sm:$0xff]  ;;  %v3113_v34 = vld [vmem:[%s4499_s3 + $0x3] ss:$0 sm:$0xff] }
   0x4   :  { %3324 = vmatprep.subr.bf16.mxu0 %v3770_v14  ;;  %v37_v50 = vld [vmem:[%s4500_s1] sm:$0x3]  ;;  %v43_v52 = vunpack.c.0.s8 %v42_v48  ;;  %v45_v53 = vshrl.u32 %v44_v49, 7  ;;  %s3774_s1 = smov 64   ;;  %s3779_s29 = smov 112   ;;  %vm1452_vm4 = vcmask 523264  }
   0x5   :  { %v38_v51 = vsub.f32 1.0, %v37_v50  ;;  %s3780_s0 = smov 48   ;;  %s3781_s13 = smov 72   ;;  %vm3075_vm8 = vcmask 7168  }
   0x6   :  { %v46_v55 = vsub.s32 %v43_v52, %v45_v53  ;;  %v282_v58 = vsub.s32 0, %v45_v53  ;;  %s3782_s14 = smov 104   ;;  %s3783_s17 = smov 40  }
   0x7   :  { %72 = vadd.xlane.f32.xlu0 %v71_v3  ;;  %3325 = vmatpush3.bf16.msra.mxu0 %v3651_v16  ;;  %v39_v54 = vmul.f32 -10000.0, %v38_v51 }
   0x8   :  { %3336 = vmatprep.subr.bf16.mxu0 %v3770_v14 }
   0x9   :  { %v47_v56 = vrot.slane %v39_v54, %v46_v55 }
   0xb   :  { %v55_v57 = vrot.slane %v47_v56, %v46_v55  ;;  %v48_v59 = vcombine.high %v47_v56, %v47_v56 }
   0xd   :  { %v3902_v60 = vrot.slane %v55_v57, %v282_v58  ;;  %v62_v61 = vrot.slane %v48_v59, %v46_v55 }
   0xf   :  { %v3905_v2 = vrot.slane %v62_v61, %v282_v58 }
  0x8c   :  { %v70_v4 = vpop.xlane.xlu0 %69 }
  0x8d   :  { %v75_v5 = vmul.f32 0.03125, %v70_v4 }
  0x8f   :  { %v77_v6 = vsub.f32 %v63_v0, %v75_v5 }
  0x90   :  { %v73_v7 = vpop.xlane.xlu0 %72 }
  0x91   :  { %v76_v8 = vmul.f32 0.03125, %v73_v7  ;;  %v79_v9 = vmul.f32 %v77_v6, %v77_v6 }
  0x93   :  { %v78_v10 = vsub.f32 %v64_v1, %v76_v8  ;;  %v81_v11 = vsel %vm67_vm0, %v79_v9, 0.0 }
  0x94   :  { %82 = vadd.xlane.f32.xlu1 %v81_v11 }
  0x95   :  { %v80_v12 = vmul.f32 %v78_v10, %v78_v10 }
  0x97   :  { %v84_v13 = vsel %vm67_vm0, %v80_v12, 0.0 }
  0x98   :  { %85 = vadd.xlane.f32.xlu1 %v84_v13 }
 0x11d   :  { %v83_v17 = vpop.xlane.xlu1 %82 }
 0x11e   :  { %v87_v18 = vmul.f32 0.03125, %v83_v17 }
 0x120   :  { %v89_v19 = vadd.f32 1e-12, %v87_v18 }
 0x121   :  { %v86_v20 = vpop.xlane.xlu1 %85 }
 0x122   :  { %3668 = vrsqrt.f32 %v89_v19  ;;  %v88_v21 = vmul.f32 0.03125, %v86_v20 }
 0x124   :  { %v90_v22 = vadd.f32 1e-12, %v88_v21 }
 0x126   :  { %3670 = vrsqrt.f32 %v90_v22 }
 0x12f   :  { %v3669_v23 = vpop.eup %3668 }
 0x130   :  { %v93_v24 = vmul.f32 %v3669_v23, %v77_v6 }
 0x132   :  { %v99_v28 = vmul.f32 %v3111_v25, %v93_v24 }
 0x133   :  { %v3671_v26 = vpop.eup %3670 }
 0x134   :  { %v94_v27 = vmul.f32 %v3671_v26, %v78_v10  ;;  %v3866_v31 = vadd.f32 %v3112_v29, %v99_v28 }
 0x136   :  { %v100_v30 = vmul.f32 %v3111_v25, %v94_v27 }
 0x138   :  { %v3868_v32 = vadd.f32 %v3112_v29, %v100_v30 }
 0x13a   :  { %v111_v33 = vpack.c.bf16 %v3868_v32, %v3866_v31 }
 0x13c   :  { %3327 = vmatmul.mubr.msk.bf16.vlgmr.msra.gmra.mxu0 %vm67_vm0, %v111_v33 }
 0x13d   :  { %3338 = vmatprep.mubr.msk.bf16.mxu0 %vm3771_vm1, %v3770_v14 }
 0x1fc   :  { %v166_v35 = vpop.f32.mrf.mxu0 }
 0x1fd   :  { %v167_v36 = vadd.f32 %v3113_v34, %v166_v35 }
 0x1fe   :  { %v3328_v37 = vpop.f32.mrf.mxu0 }
 0x1ff   :  { %v3878_v38 = vpack.c.bf16 %v167_v36, %v167_v36 }
 0x200   :  { %v169_v39 = vpop.f32.mrf.mxu0 }
 0x201   :  { %v170_v40 = vadd.f32 %v3113_v34, %v169_v39  ;;  %180 = vrot.lane.b32.xlu0 %v3878_v38, %s3772_s22 }
 0x202   :  { %v3329_v41 = vpop.f32.mrf.mxu0 }
 0x203   :  { %v3882_v42 = vpack.c.bf16 %v170_v40, %v170_v40 }
 0x205   :  { %230 = vrot.lane.b32.xlu1 %v3882_v42, %s3772_s22 }
 0x273   :  { %v181_v43 = vpop.permute.xlu0 %180 }
 0x274   :  { %v187_v44 = vsel %vm182_vm2, %v181_v43, 0 }
 0x275   :  { %3331 = vmatpush3.bf16.xpose.msra.mxu1 %v187_v44 }
 0x276   :  { %3342 = vmatprep.subr.bf16.mxu1 %v3770_v14 }
 0x277   :  { %v231_v45 = vpop.permute.xlu1 %230 }
 0x278   :  { %v236_v46 = vsel %vm182_vm2, %v231_v45, 0 }
 0x279   :  { %3337 = vmatpush3.bf16.xpose.msra.mxu0 %v236_v46 }
 0x27a   :  { %3348 = vmatprep.subr.bf16.mxu0 %v3770_v14 }
 0x27c   :  { %3333 = vmatmul.mubr.msk.bf16.vlgmr.msra.gmra.mxu1 %vm182_vm2, %v3878_v38 }
 0x27d   :  { %3344 = vmatprep.mubr.msk.bf16.mxu1 %vm3771_vm1, %v3770_v14 }
 0x280   :  { %3339 = vmatmul.mubr.msk.bf16.vlgmr.msra.gmra.mxu0 %vm182_vm2, %v3882_v42 }
 0x281   :  { %3350 = vmatprep.mubr.msk.bf16.mxu0 %vm3771_vm1, %v3770_v14 }
 0x33c   :  { %v223_v62 = vpop.f32.mrf.mxu1 }
 0x33d   :  { %v278_v63 = vmul.f32 0.35355338, %v223_v62 }
 0x33e   :  { %v3334_v0 = vpop.f32.mrf.mxu1 }
 0x33f   :  { %v290_v1 = vadd.f32 %v3902_v60, %v278_v63 }
 0x340   :  { %v226_v3 = vpop.f32.mrf.mxu1  ;;  %v272_v4 = vpop.f32.mrf.mxu0 }
 0x341   :  { %v279_v5 = vmul.f32 0.35355338, %v272_v4  ;;  %v292_v6 = vsel %vm182_vm2, %v290_v1, -inf }
 0x342   :  { %v3335_v7 = vpop.f32.mrf.mxu1  ;;  %293 = vmax.xlane.f32.xlu1 %v292_v6  ;;  %v3340_v8 = vpop.f32.mrf.mxu0 }
 0x343   :  { %v291_v9 = vadd.f32 %v3905_v2, %v279_v5 }
 0x344   :  { %v275_v10 = vpop.f32.mrf.mxu0 }
 0x345   :  { %v295_v11 = vsel %vm182_vm2, %v291_v9, -inf }
 0x346   :  { %296 = vmax.xlane.f32.xlu0 %v295_v11  ;;  %v3341_v12 = vpop.f32.mrf.mxu0 }
 0x353   :  { %365 = vrot.lane.b32.xlu1 %v3882_v42, %s3774_s1 }
 0x357   :  { %416 = vrot.lane.b32.xlu1 %v3878_v38, %s3775_s25 }
 0x3cb   :  { %v294_v13 = vpop.xlane.xlu1 %293 }
 0x3cc   :  { %v298_v15 = vsub.f32 %v290_v1, %v294_v13 }
 0x3ce   :  { %v300_v16 = vmul.f32 1.442695, %v298_v15 }
 0x3cf   :  { %v366_v17 = vpop.permute.xlu1 %365  ;;  %v297_v18 = vpop.xlane.xlu0 %296 }
 0x3d0   :  { %3672 = vpow2.f32 %v300_v16  ;;  %v371_v19 = vsel %vm321_vm3, %v366_v17, 0  ;;  %v299_v20 = vsub.f32 %v291_v9, %v297_v18 }
 0x3d1   :  { %3349 = vmatpush3.bf16.msra.mxu0 %v371_v19 }
 0x3d2   :  { %v302_v21 = vmul.f32 1.442695, %v299_v20  ;;  %3360 = vmatprep.subr.bf16.mxu0 %v3770_v14 }
 0x3d3   :  { %v417_v26 = vpop.permute.xlu1 %416 }
 0x3d4   :  { %3674 = vpow2.f32 %v302_v21  ;;  %v422_v37 = vsel %vm182_vm2, %v417_v26, 0 }
 0x3dd   :  { %v3673_v22 = vpop.eup %3672 }
 0x3de   :  { %v304_v23 = vsel %vm182_vm2, %v3673_v22, 0.0 }
 0x3df   :  { %305 = vadd.xlane.f32.xlu0 %v304_v23 }
 0x3e1   :  { %v3675_v24 = vpop.eup %3674 }
 0x3e2   :  { %v307_v25 = vsel %vm182_vm2, %v3675_v24, 0.0 }
 0x3e3   :  { %308 = vadd.xlane.f32.xlu1 %v307_v25 }
 0x3f4   :  { %466 = vrot.lane.b32.xlu1 %v3882_v42, %s3775_s25 }
 0x3f5   :  { %316 = vrot.lane.b32.xlu0 %v3878_v38, %s3774_s1 }
 0x3f8   :  { %464 = vrot.lane.b32.xlu1 %v3882_v42, %s3776_s26 }
 0x3f9   :  { %414 = vrot.lane.b32.xlu0 %v3878_v38, %s3776_s26 }
 0x468   :  { %v306_v27 = vpop.xlane.xlu0 %305 }
 0x469   :  { %3676 = vrcp.f32 %v306_v27 }
 0x46c   :  { %v309_v28 = vpop.xlane.xlu1 %308  ;;  %v317_v29 = vpop.permute.xlu0 %316 }
 0x46d   :  { %3678 = vrcp.f32 %v309_v28  ;;  %v323_v30 = vsel %vm321_vm3, %v317_v29, 0  ;;  %v175_v29 = vld [vmem:[%s4501_s5] sm:$0xf] }
 0x46e   :  { %3343 = vmatpush3.bf16.msra.mxu1 %v323_v30 }
 0x46f   :  { %3354 = vmatprep.subr.bf16.mxu1 %v3770_v14 }
 0x470   :  { %v467_v40 = vpop.permute.xlu1 %466  ;;  %v415_v44 = vpop.permute.xlu0 %414 }
 0x471   :  { %v472_v43 = vsel %vm182_vm2, %v467_v40, 0  ;;  %v176_v40 = vld [vmem:[%s4501_s5 + $0x4] sm:$0xf] }
 0x474   :  { %v465_v45 = vpop.permute.xlu1 %464 }
 0x476   :  { %v3677_v33 = vpop.eup %3676 }
 0x477   :  { %v312_v34 = vmul.f32 %v3677_v33, %v3673_v22 }
 0x479   :  { %v314_v35 = vpack.c.bf16 %v312_v34, %v312_v34  ;;  %v690_v34 = vsel %vm321_vm3, %v175_v29, 0 }
 0x47a   :  { %v3679_v36 = vpop.eup %3678 }
 0x47b   :  { %3345 = vmatmul.mubr.msk.bf16.vlgmr.msra.gmra.mxu1 %vm182_vm2, %v314_v35  ;;  %v313_v39 = vmul.f32 %v3679_v36, %v3675_v24 }
 0x47c   :  { %3355 = vmatpush3.bf16.xpose.msra.mxu1 %v422_v37  ;;  %3356 = vmatprep.mubr.msk.bf16.mxu1 %vm3771_vm1, %v3770_v14 }
 0x47d   :  { %v315_v41 = vpack.c.bf16 %v313_v39, %v313_v39  ;;  %3366 = vmatprep.subr.bf16.mxu1 %v3770_v14 }
 0x47f   :  { %3351 = vmatmul.mubr.msk.bf16.vlgmr.msra.gmra.mxu0 %vm182_vm2, %v315_v41  ;;  %v643_v41 = vsel %vm321_vm3, %v176_v40, 0 }
 0x480   :  { %3361 = vmatpush3.bf16.xpose.msra.mxu0 %v472_v43  ;;  %3362 = vmatprep.mubr.msk.bf16.mxu0 %vm3771_vm1, %v3770_v14 }
 0x481   :  { %3372 = vmatprep.subr.bf16.mxu0 %v3770_v14 }
 0x483   :  { %3357 = vmatmul.mubr.msk.bf16.vlgmr.msra.gmra.mxu1 %vm182_vm2, %v415_v44 }
 0x484   :  { %3368 = vmatprep.mubr.msk.bf16.mxu1 %vm3771_vm1, %v3770_v14 }
 0x487   :  { %3363 = vmatmul.mubr.msk.bf16.vlgmr.msra.gmra.mxu0 %vm182_vm2, %v465_v45 }
 0x488   :  { %3374 = vmatprep.mubr.msk.bf16.mxu0 %vm3771_vm1, %v3770_v14 }
 0x53b   :  { %v3944_v46 = vpop.f32.mrf.mxu1 }
 0x53d   :  { %v3346_v47 = vpop.f32.mrf.mxu1 }
 0x53f   :  { %v362_v48 = vpop.f32.mrf.mxu1  ;;  %v3946_v50 = vpop.f32.mrf.mxu0 }
 0x540   :  { %v413_v51 = vpack.c.bf16 %v3946_v50, %v3944_v46 }
 0x541   :  { %v3347_v52 = vpop.f32.mrf.mxu1  ;;  %v3352_v53 = vpop.f32.mrf.mxu0 }
 0x543   :  { %v410_v54 = vpop.f32.mrf.mxu0  ;;  %v458_v55 = vpop.f32.mrf.mxu1 }
 0x544   :  { %v514_v56 = vmul.f32 0.35355338, %v458_v55 }
 0x545   :  { %v3353_v57 = vpop.f32.mrf.mxu0  ;;  %v3358_v58 = vpop.f32.mrf.mxu1 }
 0x546   :  { %v516_v59 = vadd.f32 %v514_v56, %v3902_v60 }
 0x547   :  { %v461_v61 = vpop.f32.mrf.mxu1  ;;  %v508_v62 = vpop.f32.mrf.mxu0 }
 0x548   :  { %v515_v63 = vmul.f32 0.35355338, %v508_v62  ;;  %v518_v0 = vsel %vm182_vm2, %v516_v59, -inf }
 0x549   :  { %519 = vmax.xlane.f32.xlu0 %v518_v0  ;;  %v3359_v1 = vpop.f32.mrf.mxu1  ;;  %v3364_v3 = vpop.f32.mrf.mxu0 }
 0x54a   :  { %v517_v4 = vadd.f32 %v515_v63, %v3905_v2 }
 0x54b   :  { %v511_v5 = vpop.f32.mrf.mxu0 }
 0x54c   :  { %v521_v6 = vsel %vm182_vm2, %v517_v4, -inf }
 0x54d   :  { %522 = vmax.xlane.f32.xlu1 %v521_v6  ;;  %v3365_v7 = vpop.f32.mrf.mxu0 }
 0x55e   :  { %590 = vrot.lane.b32.xlu1 %v3882_v42, %s3777_s27 }
 0x562   :  { %735 = vrot.lane.b32.xlu1 %v3878_v38, %s3778_s28 }
 0x566   :  { %785 = vrot.lane.b32.xlu1 %v3882_v42, %s3778_s28 }
 0x56a   :  { %783 = vrot.lane.b32.xlu1 %v3882_v42, %s3779_s29 }
 0x5d2   :  { %v520_v8 = vpop.xlane.xlu0 %519 }
 0x5d3   :  { %v524_v9 = vsub.f32 %v516_v59, %v520_v8 }
 0x5d5   :  { %v526_v10 = vmul.f32 1.442695, %v524_v9 }
 0x5d6   :  { %v523_v11 = vpop.xlane.xlu1 %522 }
 0x5d7   :  { %3680 = vpow2.f32 %v526_v10  ;;  %v525_v12 = vsub.f32 %v517_v4, %v523_v11 }
 0x5d9   :  { %v528_v13 = vmul.f32 1.442695, %v525_v12 }
 0x5da   :  { %v591_v15 = vpop.permute.xlu1 %590 }
 0x5db   :  { %3682 = vpow2.f32 %v528_v13  ;;  %v596_v16 = vsel %vm321_vm3, %v591_v15, 0 }
 0x5dc   :  { %3373 = vmatpush3.bf16.msra.mxu0 %v596_v16 }
 0x5dd   :  { %3384 = vmatprep.subr.bf16.mxu0 %v3770_v14 }
 0x5de   :  { %v736_v35 = vpop.permute.xlu1 %735 }
 0x5e2   :  { %v786_v36 = vpop.permute.xlu1 %785 }
 0x5e3   :  { %v791_v37 = vsel %vm182_vm2, %v786_v36, 0 }
 0x5e4   :  { %v3681_v17 = vpop.eup %3680 }
 0x5e5   :  { %v530_v18 = vsel %vm182_vm2, %v3681_v17, 0.0 }
 0x5e6   :  { %531 = vadd.xlane.f32.xlu0 %v530_v18  ;;  %v784_v39 = vpop.permute.xlu1 %783 }
 0x5e8   :  { %v3683_v19 = vpop.eup %3682 }
 0x5e9   :  { %v533_v20 = vsel %vm182_vm2, %v3683_v19, 0.0 }
 0x5ea   :  { %534 = vadd.xlane.f32.xlu0 %v533_v20 }
 0x600   :  { %542 = vrot.lane.b32.xlu0 %v3878_v38, %s3777_s27 }
 0x604   :  { %733 = vrot.lane.b32.xlu0 %v3878_v38, %s3779_s29 }
 0x66f   :  { %v532_v21 = vpop.xlane.xlu0 %531 }
 0x670   :  { %3684 = vrcp.f32 %v532_v21 }
 0x673   :  { %v535_v22 = vpop.xlane.xlu0 %534 }
 0x674   :  { %3686 = vrcp.f32 %v535_v22 }
 0x677   :  { %v543_v23 = vpop.permute.xlu0 %542 }
 0x678   :  { %v548_v24 = vsel %vm321_vm3, %v543_v23, 0 }
 0x679   :  { %3367 = vmatpush3.bf16.msra.mxu1 %v548_v24 }
 0x67a   :  { %3378 = vmatprep.subr.bf16.mxu1 %v3770_v14 }
 0x67b   :  { %v734_v55 = vpop.permute.xlu0 %733 }
 0x67d   :  { %v3685_v25 = vpop.eup %3684 }
 0x67e   :  { %v538_v26 = vmul.f32 %v3685_v25, %v3681_v17 }
 0x680   :  { %v540_v27 = vpack.c.bf16 %v538_v26, %v538_v26 }
 0x681   :  { %v3687_v28 = vpop.eup %3686 }
 0x682   :  { %3369 = vmatmul.mubr.msk.bf16.vlgmr.msra.gmra.mxu1 %vm182_vm2, %v540_v27  ;;  %v539_v30 = vmul.f32 %v3687_v28, %v3683_v19 }
 0x683   :  { %3380 = vmatprep.mubr.msk.bf16.mxu1 %vm3771_vm1, %v3770_v14  ;;  %3379 = vmatpush3.bf16.msra.mxu1 %v643_v41 }
 0x684   :  { %v541_v33 = vpack.c.bf16 %v539_v30, %v539_v30  ;;  %3390 = vmatprep.subr.bf16.mxu1 %v3770_v14 }
 0x686   :  { %3375 = vmatmul.mubr.msk.bf16.vlgmr.msra.gmra.mxu0 %vm182_vm2, %v541_v33 }
 0x687   :  { %3385 = vmatpush3.bf16.msra.mxu0 %v690_v34  ;;  %3386 = vmatprep.mubr.msk.bf16.mxu0 %vm3771_vm1, %v3770_v14 }
 0x688   :  { %3396 = vmatprep.subr.bf16.mxu0 %v3770_v14 }
 0x68e   :  { %3387 = vmatmul.mubr.msk.bf16.vlgmr.msra.gmra.mxu0 %vm182_vm2, %v413_v51  ;;  %v741_v51 = vsel %vm182_vm2, %v736_v35, 0 }
 0x68f   :  { %3397 = vmatpush3.bf16.xpose.msra.mxu0 %v791_v37  ;;  %3398 = vmatprep.mubr.msk.bf16.mxu0 %vm3771_vm1, %v3770_v14 }
 0x690   :  { %3408 = vmatprep.subr.bf16.mxu0 %v3770_v14 }
 0x696   :  { %3399 = vmatmul.mubr.msk.bf16.vlgmr.msra.gmra.mxu0 %vm182_vm2, %v784_v39 }
 0x697   :  { %3410 = vmatprep.mubr.msk.bf16.mxu0 %vm3771_vm1, %v3770_v14 }
 0x742   :  { %v584_v43 = vpop.f32.mrf.mxu1 }
 0x744   :  { %v3370_v44 = vpop.f32.mrf.mxu1 }
 0x746   :  { %v587_v45 = vpop.f32.mrf.mxu1  ;;  %v632_v46 = vpop.f32.mrf.mxu0 }
 0x747   :  { %v638_v47 = vpack.c.bf16 %v632_v46, %v584_v43 }
 0x748   :  { %v3371_v48 = vpop.f32.mrf.mxu1  ;;  %v3376_v50 = vpop.f32.mrf.mxu0 }
 0x749   :  { %3381 = vmatmul.mubr.msk.bf16.vlgmr.msra.gmra.mxu1 %vm182_vm2, %v638_v47  ;;  %v177_v50 = vld [vmem:[%s4501_s5 + $0x8] sm:$0xf] }
 0x74a   :  { %3391 = vmatpush3.bf16.xpose.msra.mxu1 %v741_v51  ;;  %v635_v52 = vpop.f32.mrf.mxu0  ;;  %3392 = vmatprep.mubr.msk.bf16.mxu1 %vm3771_vm1, %v3770_v14  ;;  %v962_v51 = vsel %vm321_vm3, %v177_v50, 0 }
 0x74b   :  { %3402 = vmatprep.subr.bf16.mxu1 %v3770_v14 }
 0x74c   :  { %v3377_v53 = vpop.f32.mrf.mxu0 }
 0x74e   :  { %v4004_v54 = vpop.f32.mrf.mxu0 }
 0x750   :  { %v3388_v56 = vpop.f32.mrf.mxu0 }
 0x751   :  { %3393 = vmatmul.mubr.msk.bf16.vlgmr.msra.gmra.mxu1 %vm182_vm2, %v734_v55 }
 0x752   :  { %v4007_v57 = vpop.f32.mrf.mxu0  ;;  %3404 = vmatprep.mubr.msk.bf16.mxu1 %vm3771_vm1, %v3770_v14 }
 0x754   :  { %v3389_v58 = vpop.f32.mrf.mxu0 }
 0x756   :  { %v827_v59 = vpop.f32.mrf.mxu0 }
 0x757   :  { %v834_v61 = vmul.f32 0.35355338, %v827_v59 }
 0x758   :  { %v3400_v62 = vpop.f32.mrf.mxu0 }
 0x759   :  { %v836_v63 = vadd.f32 %v834_v61, %v3905_v2 }
 0x75a   :  { %v830_v0 = vpop.f32.mrf.mxu0 }
 0x75b   :  { %v840_v1 = vsel %vm182_vm2, %v836_v63, -inf }
 0x75c   :  { %841 = vmax.xlane.f32.xlu1 %v840_v1  ;;  %v3401_v3 = vpop.f32.mrf.mxu0 }
 0x76d   :  { %909 = vrot.lane.b32.xlu1 %v3882_v42, %s3780_s0 }
 0x771   :  { %1009 = vrot.lane.b32.xlu1 %v3878_v38, %s3781_s13 }
 0x775   :  { %1059 = vrot.lane.b32.xlu1 %v3882_v42, %s3781_s13 }
 0x779   :  { %1057 = vrot.lane.b32.xlu1 %v3882_v42, %s3782_s14 }
 0x7e5   :  { %v842_v4 = vpop.xlane.xlu1 %841 }
 0x7e6   :  { %v844_v7 = vsub.f32 %v836_v63, %v842_v4 }
 0x7e8   :  { %v847_v8 = vmul.f32 1.442695, %v844_v7 }
 0x7e9   :  { %v910_v5 = vpop.permute.xlu1 %909 }
 0x7ea   :  { %v915_v6 = vsel %vm321_vm3, %v910_v5, 0  ;;  %3688 = vpow2.f32 %v847_v8 }
 0x7eb   :  { %3409 = vmatpush3.bf16.msra.mxu0 %v915_v6 }
 0x7ec   :  { %3420 = vmatprep.subr.bf16.mxu0 %v3770_v14 }
 0x7ed   :  { %v1010_v33 = vpop.permute.xlu1 %1009 }
 0x7ee   :  { %v1015_v35 = vsel %vm182_vm2, %v1010_v33, 0 }
 0x7f1   :  { %v1060_v62 = vpop.permute.xlu1 %1059 }
 0x7f2   :  { %v1065_v3 = vsel %vm182_vm2, %v1060_v62, 0 }
 0x7f5   :  { %v1058_v6 = vpop.permute.xlu1 %1057 }
 0x7f7   :  { %v3689_v20 = vpop.eup %3688 }
 0x7f8   :  { %v852_v22 = vsel %vm182_vm2, %v3689_v20, 0.0 }
 0x809   :  { %v4023_v9 = vpop.f32.mrf.mxu1 }
 0x80b   :  { %v3382_v10 = vpop.f32.mrf.mxu1 }
 0x80d   :  { %v4025_v11 = vpop.f32.mrf.mxu1 }
 0x80f   :  { %v3383_v12 = vpop.f32.mrf.mxu1 }
 0x811   :  { %v777_v13 = vpop.f32.mrf.mxu1 }
 0x812   :  { %v833_v15 = vmul.f32 0.35355338, %v777_v13 }
 0x813   :  { %v3394_v16 = vpop.f32.mrf.mxu1 }
 0x814   :  { %v835_v17 = vadd.f32 %v833_v15, %v3902_v60  ;;  %v727_v15 = vadd.f32 %v4004_v54, %v4023_v9 }
 0x815   :  { %v780_v18 = vpop.f32.mrf.mxu1 }
 0x816   :  { %v837_v19 = vsel %vm182_vm2, %v835_v17, -inf }
 0x817   :  { %838 = vmax.xlane.f32.xlu0 %v837_v19  ;;  %v3395_v21 = vpop.f32.mrf.mxu1  ;;  %v730_v19 = vadd.f32 %v4007_v57, %v4025_v11 }
 0x81b   :  { %853 = vadd.xlane.f32.xlu0 %v852_v22 }
 0x8a0   :  { %v839_v23 = vpop.xlane.xlu0 %838 }
 0x8a1   :  { %v843_v24 = vsub.f32 %v835_v17, %v839_v23 }
 0x8a3   :  { %v845_v25 = vmul.f32 1.442695, %v843_v24 }
 0x8a4   :  { %v854_v26 = vpop.xlane.xlu0 %853 }
 0x8a5   :  { %3690 = vpow2.f32 %v845_v25 }
 0x8a6   :  { %3692 = vrcp.f32 %v854_v26 }
 0x8b2   :  { %v3691_v27 = vpop.eup %3690 }
 0x8b3   :  { %v3693_v28 = vpop.eup %3692  ;;  %v849_v29 = vsel %vm182_vm2, %v3691_v27, 0.0 }
 0x8b4   :  { %850 = vadd.xlane.f32.xlu0 %v849_v29  ;;  %v858_v30 = vmul.f32 %v3693_v28, %v3689_v20 }
 0x8b6   :  { %v860_v34 = vpack.c.bf16 %v858_v30, %v858_v30 }
 0x8b8   :  { %3411 = vmatmul.mubr.msk.bf16.vlgmr.msra.gmra.mxu0 %vm182_vm2, %v860_v34 }
 0x8b9   :  { %3421 = vmatpush3.bf16.xpose.msra.mxu0 %v1015_v35  ;;  %3422 = vmatprep.mubr.msk.bf16.mxu0 %vm3771_vm1, %v3770_v14 }
 0x8ba   :  { %3432 = vmatprep.subr.bf16.mxu0 %v3770_v14 }
 0x8ca   :  { %861 = vrot.lane.b32.xlu0 %v3878_v38, %s3780_s0 }
 0x8ce   :  { %1007 = vrot.lane.b32.xlu0 %v3878_v38, %s3782_s14 }
 0x93d   :  { %v851_v36 = vpop.xlane.xlu0 %850 }
 0x93e   :  { %3694 = vrcp.f32 %v851_v36 }
 0x941   :  { %v862_v37 = vpop.permute.xlu0 %861 }
 0x942   :  { %v867_v39 = vsel %vm321_vm3, %v862_v37, 0 }
 0x943   :  { %3403 = vmatpush3.bf16.msra.mxu1 %v867_v39 }
 0x944   :  { %3414 = vmatprep.subr.bf16.mxu1 %v3770_v14 }
 0x945   :  { %v1008_v40 = vpop.permute.xlu0 %1007 }
 0x946   :  { %3423 = vmatmul.mubr.msk.bf16.vlgmr.msra.gmra.mxu0 %vm182_vm2, %v1008_v40 }
 0x947   :  { %3434 = vmatprep.mubr.msk.bf16.mxu0 %vm3771_vm1, %v3770_v14 }
 0x94b   :  { %v3695_v41 = vpop.eup %3694 }
 0x94c   :  { %v857_v43 = vmul.f32 %v3695_v41, %v3691_v27 }
 0x94e   :  { %v859_v44 = vpack.c.bf16 %v857_v43, %v857_v43 }
 0x950   :  { %3405 = vmatmul.mubr.msk.bf16.vlgmr.msra.gmra.mxu1 %vm182_vm2, %v859_v44 }
 0x951   :  { %3416 = vmatprep.mubr.msk.bf16.mxu1 %vm3771_vm1, %v3770_v14  ;;  %3415 = vmatpush3.bf16.msra.mxu1 %v962_v51 }
 0x952   :  { %3426 = vmatprep.subr.bf16.mxu1 %v3770_v14 }
 0x978   :  { %v951_v45 = vpop.f32.mrf.mxu0 }
 0x97a   :  { %v3412_v46 = vpop.f32.mrf.mxu0 }
 0x97c   :  { %v954_v47 = vpop.f32.mrf.mxu0 }
 0x97e   :  { %v3413_v48 = vpop.f32.mrf.mxu0 }
 0xa06   :  { %v1051_v52 = vpop.f32.mrf.mxu0 }
 0xa07   :  { %v1107_v53 = vmul.f32 0.35355338, %v1051_v52 }
 0xa08   :  { %v3424_v55 = vpop.f32.mrf.mxu0 }
 0xa09   :  { %v1109_v56 = vadd.f32 %v1107_v53, %v3902_v60 }
 0xa0a   :  { %v1054_v58 = vpop.f32.mrf.mxu0 }
 0xa0b   :  { %v1111_v59 = vsel %vm182_vm2, %v1109_v56, -inf }
 0xa0c   :  { %1112 = vmax.xlane.f32.xlu0 %v1111_v59  ;;  %v3425_v61 = vpop.f32.mrf.mxu0 }
 0xa0d   :  { %v3137_v61 = vld [vmem:[%s4499_s3 + $0x4] ss:$0 sm:$0xff] }
 0xa10   :  { %v903_v63 = vpop.f32.mrf.mxu1 }
 0xa11   :  { %v957_v0 = vpack.c.bf16 %v951_v45, %v903_v63  ;;  %v178_v45 = vld [vmem:[%s4501_s5 + $0xc] sm:$0xf] }
 0xa12   :  { %v3406_v1 = vpop.f32.mrf.mxu1  ;;  %v1236_v46 = vsel %vm321_vm3, %v178_v45, 0 }
 0xa13   :  { %3417 = vmatmul.mubr.msk.bf16.vlgmr.msra.gmra.mxu1 %vm182_vm2, %v957_v0 }
 0xa14   :  { %3427 = vmatpush3.bf16.xpose.msra.mxu1 %v1065_v3  ;;  %v906_v4 = vpop.f32.mrf.mxu1  ;;  %3428 = vmatprep.mubr.msk.bf16.mxu1 %vm3771_vm1, %v3770_v14 }
 0xa15   :  { %3438 = vmatprep.subr.bf16.mxu1 %v3770_v14 }
 0xa16   :  { %v3407_v5 = vpop.f32.mrf.mxu1 }
 0xa1b   :  { %3429 = vmatmul.mubr.msk.bf16.vlgmr.msra.gmra.mxu1 %vm182_vm2, %v1058_v6 }
 0xa1c   :  { %3440 = vmatprep.mubr.msk.bf16.mxu1 %vm3771_vm1, %v3770_v14 }
 0xa95   :  { %v1113_v7 = vpop.xlane.xlu0 %1112 }
 0xa96   :  { %v1117_v8 = vsub.f32 %v1109_v56, %v1113_v7 }
 0xa98   :  { %v1119_v10 = vmul.f32 1.442695, %v1117_v8 }
 0xa9a   :  { %3696 = vpow2.f32 %v1119_v10 }
 0xaa7   :  { %v3697_v12 = vpop.eup %3696 }
 0xaa8   :  { %v1123_v13 = vsel %vm182_vm2, %v3697_v12, 0.0 }
 0xaa9   :  { %1124 = vadd.xlane.f32.xlu0 %v1123_v13 }
 0xad3   :  { %v998_v16 = vpop.f32.mrf.mxu1 }
 0xad4   :  { %v4066_v17 = vadd.f32 %v998_v16, %v727_v15 }
 0xad5   :  { %v3418_v18 = vpop.f32.mrf.mxu1 }
 0xad7   :  { %v1001_v20 = vpop.f32.mrf.mxu1 }
 0xad8   :  { %v4070_v21 = vadd.f32 %v1001_v20, %v730_v19 }
 0xad9   :  { %v3419_v22 = vpop.f32.mrf.mxu1 }
 0xada   :  { %v3653_v22 = vld [vmem:[%s4502_s6] sm:$0xff]  }
 0xadb   :  { %v1101_v23 = vpop.f32.mrf.mxu1 }
 0xadc   :  { %v1108_v24 = vmul.f32 0.35355338, %v1101_v23 }
 0xadd   :  { %v3430_v25 = vpop.f32.mrf.mxu1 }
 0xade   :  { %v1110_v26 = vadd.f32 %v1108_v24, %v3905_v2 }
 0xadf   :  { %v1104_v27 = vpop.f32.mrf.mxu1 }
 0xae0   :  { %v1114_v28 = vsel %vm182_vm2, %v1110_v26, -inf }
 0xae1   :  { %1115 = vmax.xlane.f32.xlu1 %v1114_v28  ;;  %v3431_v54 = vpop.f32.mrf.mxu1 }
 0xaf2   :  { %1183 = vrot.lane.b32.xlu1 %v3882_v42, %s3783_s17 }
 0xb32   :  { %v1125_v35 = vpop.xlane.xlu0 %1124 }
 0xb6a   :  { %v1116_v9 = vpop.xlane.xlu1 %1115 }
 0xb6b   :  { %v1118_v57 = vsub.f32 %v1110_v26, %v1116_v9 }
 0xb6d   :  { %v1121_v11 = vmul.f32 1.442695, %v1118_v57  ;;  %v3138_v57 = vld [vmem:[%s4499_s3 + $0x5] ss:$0 sm:$0xff] }
 0xb6e   :  { %v1184_v29 = vpop.permute.xlu1 %1183 }
 0xb6f   :  { %3698 = vpow2.f32 %v1121_v11  ;;  %v1189_v30 = vsel %vm321_vm3, %v1184_v29, 0 }
 0xb70   :  { %3439 = vmatpush3.bf16.msra.mxu1 %v1189_v30  ;;  %3700 = vrcp.f32 %v1125_v35 }
 0xb71   :  { %3450 = vmatprep.subr.bf16.mxu1 %v3770_v14 }
 0xb7c   :  { %v3699_v33 = vpop.eup %3698 }
 0xb7d   :  { %v1126_v34 = vsel %vm182_vm2, %v3699_v33, 0.0  ;;  %v3701_v42 = vpop.eup %3700 }
 0xb7e   :  { %1127 = vadd.xlane.f32.xlu0 %v1126_v34  ;;  %v1131_v37 = vmul.f32 %v3701_v42, %v3697_v12 }
 0xb80   :  { %v1133_v41 = vpack.c.bf16 %v1131_v37, %v1131_v37  ;;  %v3654_v37 = vld [vmem:[%s4503_s7 + $0x18] sm:$0xff]  }
 0xb94   :  { %1135 = vrot.lane.b32.xlu0 %v3878_v38, %s3783_s17 }
 0xc07   :  { %v1128_v36 = vpop.xlane.xlu0 %1127 }
 0xc08   :  { %3702 = vrcp.f32 %v1128_v36 }
 0xc0b   :  { %v1136_v39 = vpop.permute.xlu0 %1135 }
 0xc0c   :  { %v1141_v40 = vsel %vm321_vm3, %v1136_v39, 0  ;;  %v3655_v39 = vld [vmem:[%s4503_s7 + $0x10] sm:$0xff]  }
 0xc0d   :  { %3433 = vmatpush3.bf16.msra.mxu0 %v1141_v40  ;;  %v3656_v40 = vld [vmem:[%s4503_s7 + $0x8] sm:$0xff]  }
 0xc0e   :  { %3444 = vmatprep.subr.bf16.mxu0 %v3770_v14 }
 0xc10   :  { %3435 = vmatmul.mubr.msk.bf16.vlgmr.msra.gmra.mxu0 %vm182_vm2, %v1133_v41  ;;  %v3657_v41 = vld [vmem:[%s4503_s7] sm:$0xff]  }
 0xc11   :  { %3446 = vmatprep.mubr.msk.bf16.mxu0 %vm3771_vm1, %v3770_v14  ;;  %3445 = vmatpush3.bf16.msra.mxu0 %v1236_v46 }
 0xc12   :  { %3458 = vmatprep.subr.bf16.mxu0 %v3770_v14 }
 0xc15   :  { %v3703_v43 = vpop.eup %3702 }
 0xc16   :  { %v1132_v38 = vmul.f32 %v3703_v43, %v3699_v33  ;;  %v3139_v33 = vld [vmem:[%s4499_s3 + $0x6] ss:$0 sm:$0xff]  ;;  %v3140_v43 = vld [vmem:[%s4499_s3 + $0x7] ss:$0 sm:$0xff] }
 0xc18   :  { %v1134_v44 = vpack.c.bf16 %v1132_v38, %v1132_v38 }
 0xc1a   :  { %3441 = vmatmul.mubr.msk.bf16.vlgmr.msra.gmra.mxu1 %vm182_vm2, %v1134_v44 }
 0xc1b   :  { %3454 = vmatprep.mubr.msk.bf16.mxu1 %vm3771_vm1, %v3770_v14 }
 0xcd0   :  { %v1177_v47 = vpop.f32.mrf.mxu0 }
 0xcd2   :  { %v3436_v48 = vpop.f32.mrf.mxu0 }
 0xcd4   :  { %v1180_v50 = vpop.f32.mrf.mxu0 }
 0xcd6   :  { %v3437_v51 = vpop.f32.mrf.mxu0 }
 0xcda   :  { %v1225_v52 = vpop.f32.mrf.mxu1 }
 0xcdb   :  { %v1231_v53 = vpack.c.bf16 %v1225_v52, %v1177_v47 }
 0xcdc   :  { %v3442_v55 = vpop.f32.mrf.mxu1 }
 0xcdd   :  { %3447 = vmatmul.mubr.msk.bf16.vlgmr.msra.gmra.mxu0 %vm182_vm2, %v1231_v53 }
 0xcde   :  { %v1228_v56 = vpop.f32.mrf.mxu1  ;;  %3466 = vmatprep.mubr.msk.bf16.mxu0 %vm3771_vm1, %v3770_v14  ;;  %3459 = vmatpush3.bf16.msra.mxu0 %v3654_v37 }
 0xcdf   :  { %3460 = vmatprep.subr.bf16.mxu0 %v3770_v14 }
 0xce0   :  { %v3443_v58 = vpop.f32.mrf.mxu1 }
 0xce2   :  { %3461 = vmatpush3.bf16.msra.mxu0 %v3655_v39  ;;  %v3150_v39 = vld [vmem:[%s4499_s3 + $0x9] ss:$0 sm:$0xff] }
 0xce3   :  { %3462 = vmatprep.subr.bf16.mxu0 %v3770_v14 }
 0xce6   :  { %3463 = vmatpush3.bf16.msra.mxu0 %v3656_v40 }
 0xce7   :  { %3464 = vmatprep.subr.bf16.mxu0 %v3770_v14 }
 0xcea   :  { %3465 = vmatpush3.bf16.msra.mxu0 %v3657_v41 }
 0xceb   :  { %3484 = vmatprep.subr.bf16.mxu0 %v3770_v14 }
 0xd9d   :  { %v1272_v59 = vpop.f32.mrf.mxu0 }
 0xd9e   :  { %v1279_v62 = vadd.f32 %v1272_v59, %v4066_v17 }
 0xd9f   :  { %v3448_v63 = vpop.f32.mrf.mxu0 }
 0xda0   :  { %v1286_v0 = vadd.f32 %v3137_v61, %v1279_v62 }
 0xda1   :  { %v1275_v1 = vpop.f32.mrf.mxu0 }
 0xda2   :  { %v1280_v3 = vadd.f32 %v1275_v1, %v4070_v21  ;;  %v1288_v4 = vadd.f32 %v1286_v0, %v3866_v31 }
 0xda3   :  { %v3449_v5 = vpop.f32.mrf.mxu0 }
 0xda4   :  { %v1287_v6 = vadd.f32 %v3137_v61, %v1280_v3  ;;  %v1292_v7 = vsel %vm67_vm0, %v1288_v4, 0.0 }
 0xda5   :  { %1293 = vadd.xlane.f32.xlu1 %v1292_v7 }
 0xda6   :  { %v1289_v8 = vadd.f32 %v1287_v6, %v3868_v32  ;;  %v3652_v32 = vld [vmem:[%s4502_s6 + $0x8] sm:$0xff]  }
 0xda7   :  { %3451 = vmatpush3.bf16.msra.mxu1 %v3652_v32 }
 0xda8   :  { %v1295_v10 = vsel %vm67_vm0, %v1289_v8, 0.0  ;;  %3452 = vmatprep.subr.bf16.mxu1 %v3770_v14 }
 0xda9   :  { %1296 = vadd.xlane.f32.xlu0 %v1295_v10  ;;  %v3144_v10 = vld [vmem:[%s4499_s3 + $0x8] ss:$0 sm:$0xff] }
 0xdab   :  { %3453 = vmatpush3.bf16.msra.mxu1 %v3653_v22 }
 0xdac   :  { %3470 = vmatprep.subr.bf16.mxu1 %v3770_v14 }
 0xe2e   :  { %v1294_v12 = vpop.xlane.xlu1 %1293 }
 0xe2f   :  { %v1298_v13 = vmul.f32 0.03125, %v1294_v12 }
 0xe31   :  { %v1300_v15 = vsub.f32 %v1288_v4, %v1298_v13 }
 0xe32   :  { %v1297_v16 = vpop.xlane.xlu0 %1296 }
 0xe33   :  { %v1299_v17 = vmul.f32 0.03125, %v1297_v16  ;;  %v1302_v18 = vmul.f32 %v1300_v15, %v1300_v15 }
 0xe35   :  { %v1301_v19 = vsub.f32 %v1289_v8, %v1299_v17  ;;  %v1304_v20 = vsel %vm67_vm0, %v1302_v18, 0.0 }
 0xe36   :  { %1305 = vadd.xlane.f32.xlu0 %v1304_v20 }
 0xe37   :  { %v1303_v31 = vmul.f32 %v1301_v19, %v1301_v19 }
 0xe39   :  { %v1307_v21 = vsel %vm67_vm0, %v1303_v31, 0.0 }
 0xe3a   :  { %1308 = vadd.xlane.f32.xlu1 %v1307_v21 }
 0xebf   :  { %v1306_v23 = vpop.xlane.xlu0 %1305 }
 0xec0   :  { %v1310_v24 = vmul.f32 0.03125, %v1306_v23 }
 0xec2   :  { %v1312_v25 = vadd.f32 1e-12, %v1310_v24 }
 0xec3   :  { %v1309_v26 = vpop.xlane.xlu1 %1308 }
 0xec4   :  { %3704 = vrsqrt.f32 %v1312_v25  ;;  %v1311_v27 = vmul.f32 0.03125, %v1309_v26 }
 0xec6   :  { %v1313_v28 = vadd.f32 1e-12, %v1311_v27 }
 0xec8   :  { %3706 = vrsqrt.f32 %v1313_v28 }
 0xed1   :  { %v3705_v54 = vpop.eup %3704 }
 0xed2   :  { %v1316_v9 = vmul.f32 %v3705_v54, %v1300_v15 }
 0xed4   :  { %v1322_v30 = vmul.f32 %v3138_v57, %v1316_v9 }
 0xed5   :  { %v3707_v11 = vpop.eup %3706 }
 0xed6   :  { %v1317_v29 = vmul.f32 %v3707_v11, %v1301_v19  ;;  %v1328_v35 = vadd.f32 %v3139_v33, %v1322_v30  ;;  %v3659_v11 = vld [vmem:[%s4498_s4 + $0x10] sm:$0xff]  }
 0xed8   :  { %v1323_v34 = vmul.f32 %v3138_v57, %v1317_v29  ;;  %v3658_v57 = vld [vmem:[%s4498_s4 + $0x18] sm:$0xff]  }
 0xeda   :  { %v1329_v42 = vadd.f32 %v3139_v33, %v1323_v34 }
 0xedc   :  { %v1334_v36 = vpack.c.bf16 %v1329_v42, %v1328_v35 }
 0xede   :  { %3455 = vmatmul.mubr.msk.bf16.vlgmr.msra.gmra.mxu1 %vm67_vm0, %v1334_v36 }
 0xedf   :  { %3474 = vmatprep.mubr.msk.bf16.mxu1 %vm3771_vm1, %v3770_v14  ;;  %3471 = vmatpush3.bf16.msra.mxu1 %v3658_v57 }
 0xee0   :  { %3472 = vmatprep.subr.bf16.mxu1 %v3770_v14 }
 0xee3   :  { %3473 = vmatpush3.bf16.msra.mxu1 %v3659_v11 }
 0xee4   :  { %3478 = vmatprep.subr.bf16.mxu1 %v3770_v14 }
 0xf9e   :  { %v1389_v38 = vpop.f32.mrf.mxu1 }
 0xf9f   :  { %v1390_v44 = vadd.f32 %v3140_v43, %v1389_v38  ;;  %v3151_v38 = vld [vmem:[%s4499_s3 + $0xa] ss:$0 sm:$0xff] }
 0xfa0   :  { %v3456_v45 = vpop.f32.mrf.mxu1 }
 0xfa1   :  { %v1396_v46 = vmul.f32 %v1390_v44, %v1390_v44 }
 0xfa2   :  { %v1392_v47 = vpop.f32.mrf.mxu1 }
 0xfa3   :  { %v1398_v48 = vmul.f32 %v1396_v46, %v1390_v44  ;;  %v1393_v50 = vadd.f32 %v3140_v43, %v1392_v47 }
 0xfa4   :  { %v3457_v51 = vpop.f32.mrf.mxu1 }
 0xfa5   :  { %v1400_v52 = vmul.f32 0.044715, %v1398_v48  ;;  %v1397_v53 = vmul.f32 %v1393_v50, %v1393_v50  ;;  %v3156_v48 = vld [vmem:[%s4499_s3 + $0xb] ss:$0 sm:$0xff] }
 0xfa7   :  { %v1402_v55 = vadd.f32 %v1400_v52, %v1390_v44  ;;  %v1399_v56 = vmul.f32 %v1397_v53, %v1393_v50 }
 0xfa9   :  { %v1404_v58 = vmul.f32 0.7978846, %v1402_v55  ;;  %v1401_v59 = vmul.f32 0.044715, %v1399_v56 }
 0xfab   :  { %3708 = vtanh.f32 %v1404_v58  ;;  %v1403_v61 = vadd.f32 %v1401_v59, %v1393_v50 }
 0xfad   :  { %v1405_v62 = vmul.f32 0.7978846, %v1403_v61 }
 0xfaf   :  { %3710 = vtanh.f32 %v1405_v62 }
 0xfb8   :  { %v3709_v63 = vpop.eup %3708 }
 0xfb9   :  { %v1408_v0 = vadd.f32 1.0, %v3709_v63 }
 0xfbb   :  { %v1410_v3 = vmul.f32 0.5, %v1408_v0 }
 0xfbc   :  { %v3711_v1 = vpop.eup %3710 }
 0xfbd   :  { %v1409_v4 = vadd.f32 1.0, %v3711_v1  ;;  %v1412_v6 = vmul.f32 %v1410_v3, %v1390_v44 }
 0xfbf   :  { %v1411_v5 = vmul.f32 0.5, %v1409_v4 }
 0xfc1   :  { %v1413_v7 = vmul.f32 %v1411_v5, %v1393_v50 }
 0xfc3   :  { %v1422_v8 = vpack.c.bf16 %v1413_v7, %v1412_v6 }
 0xfc5   :  { %3467 = vmatmul.mubr.msk.bf16.vlgmr.msra.gmra.mxu0 %vm1452_vm4, %v1422_v8 }
 0xfc6   :  { %3486 = vmatprep.mubr.msk.bf16.mxu0 %vm3771_vm1, %v3770_v14 }
0x1085   :  { %v1490_v12 = vpop.f32.mrf.mxu0 }
0x1086   :  { %v1491_v13 = vadd.f32 %v3144_v10, %v1490_v12 }
0x1087   :  { %v3468_v15 = vpop.f32.mrf.mxu0 }
0x1088   :  { %v1497_v16 = vadd.f32 %v1491_v13, %v1328_v35 }
0x1089   :  { %v1493_v17 = vpop.f32.mrf.mxu0 }
0x108a   :  { %v1494_v18 = vadd.f32 %v3144_v10, %v1493_v17  ;;  %v1501_v19 = vsel %vm67_vm0, %v1497_v16, 0.0 }
0x108b   :  { %1502 = vadd.xlane.f32.xlu0 %v1501_v19  ;;  %v3469_v20 = vpop.f32.mrf.mxu0 }
0x108c   :  { %v1498_v31 = vadd.f32 %v1494_v18, %v1329_v42 }
0x108e   :  { %v1504_v21 = vsel %vm67_vm0, %v1498_v31, 0.0 }
0x108f   :  { %1505 = vadd.xlane.f32.xlu1 %v1504_v21 }
0x1114   :  { %v1503_v32 = vpop.xlane.xlu0 %1502 }
0x1115   :  { %v1507_v22 = vmul.f32 0.03125, %v1503_v32 }
0x1117   :  { %v1509_v23 = vsub.f32 %v1497_v16, %v1507_v22 }
0x1118   :  { %v1506_v24 = vpop.xlane.xlu1 %1505 }
0x1119   :  { %v1508_v25 = vmul.f32 0.03125, %v1506_v24  ;;  %v1511_v26 = vmul.f32 %v1509_v23, %v1509_v23 }
0x111b   :  { %v1510_v27 = vsub.f32 %v1498_v31, %v1508_v25  ;;  %v1513_v28 = vsel %vm67_vm0, %v1511_v26, 0.0 }
0x111c   :  { %1514 = vadd.xlane.f32.xlu0 %v1513_v28 }
0x111d   :  { %v1512_v54 = vmul.f32 %v1510_v27, %v1510_v27 }
0x111f   :  { %v1516_v9 = vsel %vm67_vm0, %v1512_v54, 0.0 }
0x1120   :  { %1517 = vadd.xlane.f32.xlu1 %v1516_v9 }
0x11a5   :  { %v1515_v29 = vpop.xlane.xlu0 %1514 }
0x11a6   :  { %v1519_v30 = vmul.f32 0.03125, %v1515_v29 }
0x11a8   :  { %v1521_v33 = vadd.f32 1e-12, %v1519_v30 }
0x11a9   :  { %v1518_v34 = vpop.xlane.xlu1 %1517 }
0x11aa   :  { %3712 = vrsqrt.f32 %v1521_v33  ;;  %v1520_v35 = vmul.f32 0.03125, %v1518_v34 }
0x11ac   :  { %v1522_v42 = vadd.f32 1e-12, %v1520_v35 }
0x11ae   :  { %3714 = vrsqrt.f32 %v1522_v42 }
0x11b7   :  { %v3713_v36 = vpop.eup %3712 }
0x11b8   :  { %v1525_v37 = vmul.f32 %v3713_v36, %v1509_v23 }
0x11ba   :  { %v1531_v43 = vmul.f32 %v3150_v39, %v1525_v37 }
0x11bb   :  { %v3715_v40 = vpop.eup %3714 }
0x11bc   :  { %v1526_v41 = vmul.f32 %v3715_v40, %v1510_v27  ;;  %v4168_v45 = vadd.f32 %v3151_v38, %v1531_v43 }
0x11be   :  { %v1532_v44 = vmul.f32 %v3150_v39, %v1526_v41 }
0x11c0   :  { %v4170_v46 = vadd.f32 %v3151_v38, %v1532_v44 }
0x11c2   :  { %v1544_v47 = vpack.c.bf16 %v4170_v46, %v4168_v45 }
0x11c4   :  { %3475 = vmatmul.mubr.msk.bf16.vlgmr.msra.gmra.mxu1 %vm67_vm0, %v1544_v47 }
0x11c5   :  { %3480 = vmatprep.mubr.msk.bf16.mxu1 %vm3771_vm1, %v3770_v14 }
0x1284   :  { %v1599_v50 = vpop.f32.mrf.mxu1 }
0x1285   :  { %v1600_v51 = vadd.f32 %v3156_v48, %v1599_v50 }
0x1286   :  { %v3476_v52 = vpop.f32.mrf.mxu1 }
0x1287   :  { %v4180_v53 = vpack.c.bf16 %v1600_v51, %v1600_v51 }
0x1288   :  { %v1602_v55 = vpop.f32.mrf.mxu1 }
0x1289   :  { %v1603_v56 = vadd.f32 %v3156_v48, %v1602_v55  ;;  %1614 = vrot.lane.b32.xlu0 %v4180_v53, %s3772_s22 }
0x128a   :  { %v3477_v58 = vpop.f32.mrf.mxu1 }
0x128b   :  { %v4184_v59 = vpack.c.bf16 %v1603_v56, %v1603_v56 }
0x128d   :  { %1663 = vrot.lane.b32.xlu1 %v4184_v59, %s3772_s22 }
0x12fb   :  { %v1615_v61 = vpop.permute.xlu0 %1614 }
0x12fc   :  { %v1620_v62 = vsel %vm182_vm2, %v1615_v61, 0 }
0x12fd   :  { %3479 = vmatpush3.bf16.xpose.msra.mxu1 %v1620_v62 }
0x12fe   :  { %3490 = vmatprep.subr.bf16.mxu1 %v3770_v14 }
0x12ff   :  { %v1664_v63 = vpop.permute.xlu1 %1663 }
0x1300   :  { %v1669_v0 = vsel %vm182_vm2, %v1664_v63, 0 }
0x1301   :  { %3485 = vmatpush3.bf16.xpose.msra.mxu0 %v1669_v0 }
0x1302   :  { %3496 = vmatprep.subr.bf16.mxu0 %v3770_v14 }
0x1304   :  { %3481 = vmatmul.mubr.msk.bf16.vlgmr.msra.gmra.mxu1 %vm182_vm2, %v4180_v53 }
0x1305   :  { %3492 = vmatprep.mubr.msk.bf16.mxu1 %vm3771_vm1, %v3770_v14 }
0x1308   :  { %3487 = vmatmul.mubr.msk.bf16.vlgmr.msra.gmra.mxu0 %vm182_vm2, %v4184_v59 }
0x1309   :  { %3498 = vmatprep.mubr.msk.bf16.mxu0 %vm3771_vm1, %v3770_v14 }
0x13c4   :  { %v1656_v1 = vpop.f32.mrf.mxu1 }
0x13c5   :  { %v1711_v3 = vmul.f32 0.35355338, %v1656_v1 }
0x13c6   :  { %v3482_v4 = vpop.f32.mrf.mxu1 }
0x13c7   :  { %v1713_v5 = vadd.f32 %v1711_v3, %v3902_v60 }
0x13c8   :  { %v1659_v6 = vpop.f32.mrf.mxu1  ;;  %v1705_v7 = vpop.f32.mrf.mxu0 }
0x13c9   :  { %v1712_v8 = vmul.f32 0.35355338, %v1705_v7  ;;  %v1715_v10 = vsel %vm182_vm2, %v1713_v5, -inf }
0x13ca   :  { %1716 = vmax.xlane.f32.xlu1 %v1715_v10  ;;  %v3483_v12 = vpop.f32.mrf.mxu1  ;;  %v3488_v13 = vpop.f32.mrf.mxu0 }
0x13cb   :  { %v1714_v15 = vadd.f32 %v1712_v8, %v3905_v2 }
0x13cc   :  { %v1708_v16 = vpop.f32.mrf.mxu0 }
0x13cd   :  { %v1718_v17 = vsel %vm182_vm2, %v1714_v15, -inf }
0x13ce   :  { %1719 = vmax.xlane.f32.xlu0 %v1718_v17  ;;  %v3489_v18 = vpop.f32.mrf.mxu0 }
0x13db   :  { %1787 = vrot.lane.b32.xlu1 %v4184_v59, %s3774_s1 }
0x13df   :  { %1838 = vrot.lane.b32.xlu1 %v4180_v53, %s3775_s25 }
0x1453   :  { %v1717_v19 = vpop.xlane.xlu1 %1716 }
0x1454   :  { %v1721_v20 = vsub.f32 %v1713_v5, %v1717_v19 }
0x1456   :  { %v1723_v31 = vmul.f32 1.442695, %v1721_v20 }
0x1457   :  { %v1788_v21 = vpop.permute.xlu1 %1787  ;;  %v1720_v32 = vpop.xlane.xlu0 %1719 }
0x1458   :  { %3716 = vpow2.f32 %v1723_v31  ;;  %v1793_v22 = vsel %vm321_vm3, %v1788_v21, 0  ;;  %v1722_v23 = vsub.f32 %v1714_v15, %v1720_v32 }
0x1459   :  { %3497 = vmatpush3.bf16.msra.mxu0 %v1793_v22 }
0x145a   :  { %v1725_v24 = vmul.f32 1.442695, %v1722_v23  ;;  %3508 = vmatprep.subr.bf16.mxu0 %v3770_v14 }
0x145b   :  { %v1839_v54 = vpop.permute.xlu1 %1838 }
0x145c   :  { %3718 = vpow2.f32 %v1725_v24  ;;  %v1844_v42 = vsel %vm182_vm2, %v1839_v54, 0 }
0x1465   :  { %v3717_v25 = vpop.eup %3716 }
0x1466   :  { %v1727_v26 = vsel %vm182_vm2, %v3717_v25, 0.0 }
0x1467   :  { %1728 = vadd.xlane.f32.xlu0 %v1727_v26 }
0x1469   :  { %v3719_v27 = vpop.eup %3718 }
0x146a   :  { %v1730_v28 = vsel %vm182_vm2, %v3719_v27, 0.0 }
0x146b   :  { %1731 = vadd.xlane.f32.xlu1 %v1730_v28 }
0x147c   :  { %1888 = vrot.lane.b32.xlu1 %v4184_v59, %s3775_s25 }
0x147d   :  { %1739 = vrot.lane.b32.xlu0 %v4180_v53, %s3774_s1 }
0x1480   :  { %1886 = vrot.lane.b32.xlu1 %v4184_v59, %s3776_s26 }
0x1481   :  { %1836 = vrot.lane.b32.xlu0 %v4180_v53, %s3776_s26 }
0x14f0   :  { %v1729_v9 = vpop.xlane.xlu0 %1728 }
0x14f1   :  { %3720 = vrcp.f32 %v1729_v9 }
0x14f4   :  { %v1732_v57 = vpop.xlane.xlu1 %1731  ;;  %v1740_v11 = vpop.permute.xlu0 %1739 }
0x14f5   :  { %3722 = vrcp.f32 %v1732_v57  ;;  %v1745_v29 = vsel %vm321_vm3, %v1740_v11, 0  ;;  %v3160_v11 = vld [vmem:[%s4501_s5 + $0x10] sm:$0xf] }
0x14f6   :  { %3491 = vmatpush3.bf16.msra.mxu1 %v1745_v29 }
0x14f7   :  { %3502 = vmatprep.subr.bf16.mxu1 %v3770_v14 }
0x14f8   :  { %v1889_v37 = vpop.permute.xlu1 %1888  ;;  %v1837_v41 = vpop.permute.xlu0 %1836 }
0x14f9   :  { %v1894_v40 = vsel %vm182_vm2, %v1889_v37, 0  ;;  %v3161_v37 = vld [vmem:[%s4501_s5 + $0x14] sm:$0xf] }
0x14fc   :  { %v1887_v43 = vpop.permute.xlu1 %1886 }
0x14fe   :  { %v3721_v30 = vpop.eup %3720 }
0x14ff   :  { %v1735_v33 = vmul.f32 %v3721_v30, %v3717_v25 }
0x1501   :  { %v1737_v34 = vpack.c.bf16 %v1735_v33, %v1735_v33  ;;  %v2112_v33 = vsel %vm321_vm3, %v3160_v11, 0 }
0x1502   :  { %v3723_v35 = vpop.eup %3722 }
0x1503   :  { %3493 = vmatmul.mubr.msk.bf16.vlgmr.msra.gmra.mxu1 %vm182_vm2, %v1737_v34  ;;  %v1736_v36 = vmul.f32 %v3723_v35, %v3719_v27 }
0x1504   :  { %3503 = vmatpush3.bf16.xpose.msra.mxu1 %v1844_v42  ;;  %3504 = vmatprep.mubr.msk.bf16.mxu1 %vm3771_vm1, %v3770_v14 }
0x1505   :  { %v1738_v39 = vpack.c.bf16 %v1736_v36, %v1736_v36  ;;  %3514 = vmatprep.subr.bf16.mxu1 %v3770_v14 }
0x1507   :  { %3499 = vmatmul.mubr.msk.bf16.vlgmr.msra.gmra.mxu0 %vm182_vm2, %v1738_v39  ;;  %v2065_v39 = vsel %vm321_vm3, %v3161_v37, 0 }
0x1508   :  { %3509 = vmatpush3.bf16.xpose.msra.mxu0 %v1894_v40  ;;  %3510 = vmatprep.mubr.msk.bf16.mxu0 %vm3771_vm1, %v3770_v14 }
0x1509   :  { %3520 = vmatprep.subr.bf16.mxu0 %v3770_v14 }
0x150b   :  { %3505 = vmatmul.mubr.msk.bf16.vlgmr.msra.gmra.mxu1 %vm182_vm2, %v1837_v41 }
0x150c   :  { %3516 = vmatprep.mubr.msk.bf16.mxu1 %vm3771_vm1, %v3770_v14 }
0x150f   :  { %3511 = vmatmul.mubr.msk.bf16.vlgmr.msra.gmra.mxu0 %vm182_vm2, %v1887_v43 }
0x1510   :  { %3522 = vmatprep.mubr.msk.bf16.mxu0 %vm3771_vm1, %v3770_v14 }
0x15c3   :  { %v4238_v38 = vpop.f32.mrf.mxu1 }
0x15c5   :  { %v3494_v44 = vpop.f32.mrf.mxu1 }
0x15c7   :  { %v1784_v47 = vpop.f32.mrf.mxu1  ;;  %v4240_v48 = vpop.f32.mrf.mxu0 }
0x15c8   :  { %v1835_v50 = vpack.c.bf16 %v4240_v48, %v4238_v38 }
0x15c9   :  { %v3495_v51 = vpop.f32.mrf.mxu1  ;;  %v3500_v52 = vpop.f32.mrf.mxu0 }
0x15cb   :  { %v1832_v55 = vpop.f32.mrf.mxu0  ;;  %v1880_v56 = vpop.f32.mrf.mxu1 }
0x15cc   :  { %v1936_v58 = vmul.f32 0.35355338, %v1880_v56 }
0x15cd   :  { %v3501_v61 = vpop.f32.mrf.mxu0  ;;  %v3506_v62 = vpop.f32.mrf.mxu1 }
0x15ce   :  { %v1938_v63 = vadd.f32 %v1936_v58, %v3902_v60 }
0x15cf   :  { %v1883_v0 = vpop.f32.mrf.mxu1  ;;  %v1930_v1 = vpop.f32.mrf.mxu0 }
0x15d0   :  { %v1937_v3 = vmul.f32 0.35355338, %v1930_v1  ;;  %v1940_v4 = vsel %vm182_vm2, %v1938_v63, -inf }
0x15d1   :  { %1941 = vmax.xlane.f32.xlu0 %v1940_v4  ;;  %v3507_v5 = vpop.f32.mrf.mxu1  ;;  %v3512_v6 = vpop.f32.mrf.mxu0 }
0x15d2   :  { %v1939_v7 = vadd.f32 %v1937_v3, %v3905_v2 }
0x15d3   :  { %v1933_v8 = vpop.f32.mrf.mxu0 }
0x15d4   :  { %v1943_v10 = vsel %vm182_vm2, %v1939_v7, -inf }
0x15d5   :  { %1944 = vmax.xlane.f32.xlu1 %v1943_v10  ;;  %v3513_v12 = vpop.f32.mrf.mxu0 }
0x15e6   :  { %2012 = vrot.lane.b32.xlu1 %v4184_v59, %s3777_s27 }
0x15ea   :  { %2157 = vrot.lane.b32.xlu1 %v4180_v53, %s3778_s28 }
0x15ee   :  { %2207 = vrot.lane.b32.xlu1 %v4184_v59, %s3778_s28 }
0x15f2   :  { %2205 = vrot.lane.b32.xlu1 %v4184_v59, %s3779_s29 }
0x165a   :  { %v1942_v13 = vpop.xlane.xlu0 %1941 }
0x165b   :  { %v1946_v15 = vsub.f32 %v1938_v63, %v1942_v13 }
0x165d   :  { %v1948_v16 = vmul.f32 1.442695, %v1946_v15 }
0x165e   :  { %v1945_v17 = vpop.xlane.xlu1 %1944 }
0x165f   :  { %3724 = vpow2.f32 %v1948_v16  ;;  %v1947_v18 = vsub.f32 %v1939_v7, %v1945_v17 }
0x1661   :  { %v1950_v19 = vmul.f32 1.442695, %v1947_v18 }
0x1662   :  { %v2013_v20 = vpop.permute.xlu1 %2012 }
0x1663   :  { %3726 = vpow2.f32 %v1950_v19  ;;  %v2018_v31 = vsel %vm321_vm3, %v2013_v20, 0 }
0x1664   :  { %3521 = vmatpush3.bf16.msra.mxu0 %v2018_v31 }
0x1665   :  { %3532 = vmatprep.subr.bf16.mxu0 %v3770_v14 }
0x1666   :  { %v2158_v34 = vpop.permute.xlu1 %2157 }
0x166a   :  { %v2208_v35 = vpop.permute.xlu1 %2207 }
0x166b   :  { %v2213_v42 = vsel %vm182_vm2, %v2208_v35, 0 }
0x166c   :  { %v3725_v21 = vpop.eup %3724 }
0x166d   :  { %v1952_v32 = vsel %vm182_vm2, %v3725_v21, 0.0 }
0x166e   :  { %1953 = vadd.xlane.f32.xlu0 %v1952_v32  ;;  %v2206_v36 = vpop.permute.xlu1 %2205 }
0x1670   :  { %v3727_v22 = vpop.eup %3726 }
0x1671   :  { %v1955_v23 = vsel %vm182_vm2, %v3727_v22, 0.0 }
0x1672   :  { %1956 = vadd.xlane.f32.xlu0 %v1955_v23 }
0x1688   :  { %1964 = vrot.lane.b32.xlu0 %v4180_v53, %s3777_s27 }
0x168c   :  { %2155 = vrot.lane.b32.xlu0 %v4180_v53, %s3779_s29 }
0x16f7   :  { %v1954_v24 = vpop.xlane.xlu0 %1953 }
0x16f8   :  { %3728 = vrcp.f32 %v1954_v24 }
0x16fb   :  { %v1957_v25 = vpop.xlane.xlu0 %1956 }
0x16fc   :  { %3730 = vrcp.f32 %v1957_v25 }
0x16ff   :  { %v1965_v26 = vpop.permute.xlu0 %1964 }
0x1700   :  { %v1970_v27 = vsel %vm321_vm3, %v1965_v26, 0 }
0x1701   :  { %3515 = vmatpush3.bf16.msra.mxu1 %v1970_v27 }
0x1702   :  { %3526 = vmatprep.subr.bf16.mxu1 %v3770_v14 }
0x1703   :  { %v2156_v56 = vpop.permute.xlu0 %2155 }
0x1705   :  { %v3729_v28 = vpop.eup %3728 }
0x1706   :  { %v1960_v54 = vmul.f32 %v3729_v28, %v3725_v21 }
0x1708   :  { %v1962_v9 = vpack.c.bf16 %v1960_v54, %v1960_v54 }
0x1709   :  { %v3731_v57 = vpop.eup %3730 }
0x170a   :  { %3517 = vmatmul.mubr.msk.bf16.vlgmr.msra.gmra.mxu1 %vm182_vm2, %v1962_v9  ;;  %v1961_v29 = vmul.f32 %v3731_v57, %v3727_v22 }
0x170b   :  { %3528 = vmatprep.mubr.msk.bf16.mxu1 %vm3771_vm1, %v3770_v14  ;;  %3527 = vmatpush3.bf16.msra.mxu1 %v2065_v39 }
0x170c   :  { %v1963_v30 = vpack.c.bf16 %v1961_v29, %v1961_v29  ;;  %3538 = vmatprep.subr.bf16.mxu1 %v3770_v14 }
0x170e   :  { %3523 = vmatmul.mubr.msk.bf16.vlgmr.msra.gmra.mxu0 %vm182_vm2, %v1963_v30 }
0x170f   :  { %3533 = vmatpush3.bf16.msra.mxu0 %v2112_v33  ;;  %3534 = vmatprep.mubr.msk.bf16.mxu0 %vm3771_vm1, %v3770_v14 }
0x1710   :  { %3544 = vmatprep.subr.bf16.mxu0 %v3770_v14 }
0x1716   :  { %3535 = vmatmul.mubr.msk.bf16.vlgmr.msra.gmra.mxu0 %vm182_vm2, %v1835_v50  ;;  %v2163_v50 = vsel %vm182_vm2, %v2158_v34, 0 }
0x1717   :  { %3545 = vmatpush3.bf16.xpose.msra.mxu0 %v2213_v42  ;;  %3546 = vmatprep.mubr.msk.bf16.mxu0 %vm3771_vm1, %v3770_v14 }
0x1718   :  { %3556 = vmatprep.subr.bf16.mxu0 %v3770_v14 }
0x171e   :  { %3547 = vmatmul.mubr.msk.bf16.vlgmr.msra.gmra.mxu0 %vm182_vm2, %v2206_v36 }
0x171f   :  { %3558 = vmatprep.mubr.msk.bf16.mxu0 %vm3771_vm1, %v3770_v14 }
0x17ca   :  { %v2006_v40 = vpop.f32.mrf.mxu1 }
0x17cc   :  { %v3518_v41 = vpop.f32.mrf.mxu1 }
0x17ce   :  { %v2009_v43 = vpop.f32.mrf.mxu1  ;;  %v2054_v38 = vpop.f32.mrf.mxu0 }
0x17cf   :  { %v2060_v44 = vpack.c.bf16 %v2054_v38, %v2006_v40 }
0x17d0   :  { %v3519_v47 = vpop.f32.mrf.mxu1  ;;  %v3524_v48 = vpop.f32.mrf.mxu0 }
0x17d1   :  { %3529 = vmatmul.mubr.msk.bf16.vlgmr.msra.gmra.mxu1 %vm182_vm2, %v2060_v44  ;;  %v3162_v48 = vld [vmem:[%s4501_s5 + $0x18] sm:$0xf] }
0x17d2   :  { %3539 = vmatpush3.bf16.xpose.msra.mxu1 %v2163_v50  ;;  %v2057_v51 = vpop.f32.mrf.mxu0  ;;  %3540 = vmatprep.mubr.msk.bf16.mxu1 %vm3771_vm1, %v3770_v14  ;;  %v2384_v50 = vsel %vm321_vm3, %v3162_v48, 0 }
0x17d3   :  { %3550 = vmatprep.subr.bf16.mxu1 %v3770_v14 }
0x17d4   :  { %v3525_v52 = vpop.f32.mrf.mxu0 }
0x17d6   :  { %v4298_v55 = vpop.f32.mrf.mxu0 }
0x17d8   :  { %v3536_v58 = vpop.f32.mrf.mxu0 }
0x17d9   :  { %3541 = vmatmul.mubr.msk.bf16.vlgmr.msra.gmra.mxu1 %vm182_vm2, %v2156_v56 }
0x17da   :  { %v4301_v61 = vpop.f32.mrf.mxu0  ;;  %3552 = vmatprep.mubr.msk.bf16.mxu1 %vm3771_vm1, %v3770_v14 }
0x17dc   :  { %v3537_v62 = vpop.f32.mrf.mxu0 }
0x17de   :  { %v2249_v63 = vpop.f32.mrf.mxu0 }
0x17df   :  { %v2256_v0 = vmul.f32 0.35355338, %v2249_v63 }
0x17e0   :  { %v3548_v1 = vpop.f32.mrf.mxu0 }
0x17e1   :  { %v2258_v3 = vadd.f32 %v2256_v0, %v3905_v2 }
0x17e2   :  { %v2252_v4 = vpop.f32.mrf.mxu0 }
0x17e3   :  { %v2262_v5 = vsel %vm182_vm2, %v2258_v3, -inf }
0x17e4   :  { %2263 = vmax.xlane.f32.xlu1 %v2262_v5  ;;  %v3549_v6 = vpop.f32.mrf.mxu0 }
0x17f5   :  { %2331 = vrot.lane.b32.xlu1 %v4184_v59, %s3780_s0 }
0x17f9   :  { %2431 = vrot.lane.b32.xlu1 %v4180_v53, %s3781_s13 }
0x17fd   :  { %2481 = vrot.lane.b32.xlu1 %v4184_v59, %s3781_s13 }
0x1801   :  { %2479 = vrot.lane.b32.xlu1 %v4184_v59, %s3782_s14 }
0x186d   :  { %v2264_v7 = vpop.xlane.xlu1 %2263 }
0x186e   :  { %v2266_v12 = vsub.f32 %v2258_v3, %v2264_v7 }
0x1870   :  { %v2269_v13 = vmul.f32 1.442695, %v2266_v12 }
0x1871   :  { %v2332_v8 = vpop.permute.xlu1 %2331 }
0x1872   :  { %v2337_v10 = vsel %vm321_vm3, %v2332_v8, 0  ;;  %3732 = vpow2.f32 %v2269_v13 }
0x1873   :  { %3557 = vmatpush3.bf16.msra.mxu0 %v2337_v10 }
0x1874   :  { %3568 = vmatprep.subr.bf16.mxu0 %v3770_v14 }
0x1875   :  { %v2432_v30 = vpop.permute.xlu1 %2431 }
0x1876   :  { %v2437_v34 = vsel %vm182_vm2, %v2432_v30, 0 }
0x1879   :  { %v2482_v1 = vpop.permute.xlu1 %2481 }
0x187a   :  { %v2487_v6 = vsel %vm182_vm2, %v2482_v1, 0 }
0x187d   :  { %v2480_v8 = vpop.permute.xlu1 %2479 }
0x187f   :  { %v3733_v23 = vpop.eup %3732 }
0x1880   :  { %v2274_v25 = vsel %vm182_vm2, %v3733_v23, 0.0 }
0x1891   :  { %v4317_v15 = vpop.f32.mrf.mxu1 }
0x1893   :  { %v3530_v16 = vpop.f32.mrf.mxu1 }
0x1895   :  { %v4319_v17 = vpop.f32.mrf.mxu1 }
0x1897   :  { %v3531_v18 = vpop.f32.mrf.mxu1 }
0x1899   :  { %v2199_v19 = vpop.f32.mrf.mxu1 }
0x189a   :  { %v2255_v20 = vmul.f32 0.35355338, %v2199_v19  ;;  %v2149_v19 = vadd.f32 %v4298_v55, %v4317_v15 }
0x189b   :  { %v3542_v31 = vpop.f32.mrf.mxu1 }
0x189c   :  { %v2257_v21 = vadd.f32 %v2255_v20, %v3902_v60 }
0x189d   :  { %v2202_v32 = vpop.f32.mrf.mxu1 }
0x189e   :  { %v2259_v22 = vsel %vm182_vm2, %v2257_v21, -inf  ;;  %v2152_v32 = vadd.f32 %v4301_v61, %v4319_v17 }
0x189f   :  { %2260 = vmax.xlane.f32.xlu0 %v2259_v22  ;;  %v3543_v24 = vpop.f32.mrf.mxu1 }
0x18a3   :  { %2275 = vadd.xlane.f32.xlu0 %v2274_v25 }
0x1928   :  { %v2261_v26 = vpop.xlane.xlu0 %2260 }
0x1929   :  { %v2265_v27 = vsub.f32 %v2257_v21, %v2261_v26 }
0x192b   :  { %v2267_v28 = vmul.f32 1.442695, %v2265_v27 }
0x192c   :  { %v2276_v54 = vpop.xlane.xlu0 %2275 }
0x192d   :  { %3734 = vpow2.f32 %v2267_v28 }
0x192e   :  { %3736 = vrcp.f32 %v2276_v54 }
0x193a   :  { %v3735_v9 = vpop.eup %3734 }
0x193b   :  { %v3737_v57 = vpop.eup %3736  ;;  %v2271_v11 = vsel %vm182_vm2, %v3735_v9, 0.0 }
0x193c   :  { %2272 = vadd.xlane.f32.xlu0 %v2271_v11  ;;  %v2280_v29 = vmul.f32 %v3737_v57, %v3733_v23 }
0x193e   :  { %v2282_v33 = vpack.c.bf16 %v2280_v29, %v2280_v29 }
0x1940   :  { %3559 = vmatmul.mubr.msk.bf16.vlgmr.msra.gmra.mxu0 %vm182_vm2, %v2282_v33 }
0x1941   :  { %3569 = vmatpush3.bf16.xpose.msra.mxu0 %v2437_v34  ;;  %3570 = vmatprep.mubr.msk.bf16.mxu0 %vm3771_vm1, %v3770_v14 }
0x1942   :  { %3580 = vmatprep.subr.bf16.mxu0 %v3770_v14 }
0x1952   :  { %2283 = vrot.lane.b32.xlu0 %v4180_v53, %s3780_s0 }
0x1956   :  { %2429 = vrot.lane.b32.xlu0 %v4180_v53, %s3782_s14 }
0x19c5   :  { %v2273_v35 = vpop.xlane.xlu0 %2272 }
0x19c6   :  { %3738 = vrcp.f32 %v2273_v35 }
0x19c9   :  { %v2284_v42 = vpop.permute.xlu0 %2283 }
0x19ca   :  { %v2289_v36 = vsel %vm321_vm3, %v2284_v42, 0 }
0x19cb   :  { %3551 = vmatpush3.bf16.msra.mxu1 %v2289_v36 }
0x19cc   :  { %3562 = vmatprep.subr.bf16.mxu1 %v3770_v14 }
0x19cd   :  { %v2430_v37 = vpop.permute.xlu0 %2429 }
0x19ce   :  { %3571 = vmatmul.mubr.msk.bf16.vlgmr.msra.gmra.mxu0 %vm182_vm2, %v2430_v37 }
0x19cf   :  { %3582 = vmatprep.mubr.msk.bf16.mxu0 %vm3771_vm1, %v3770_v14 }
0x19d3   :  { %v3739_v39 = vpop.eup %3738 }
0x19d4   :  { %v2279_v40 = vmul.f32 %v3739_v39, %v3735_v9 }
0x19d6   :  { %v2281_v41 = vpack.c.bf16 %v2279_v40, %v2279_v40  ;;  %v3163_v40 = vld [vmem:[%s4501_s5 + $0x1c] sm:$0xf] }
0x19d8   :  { %3553 = vmatmul.mubr.msk.bf16.vlgmr.msra.gmra.mxu1 %vm182_vm2, %v2281_v41  ;;  %v2658_v41 = vsel %vm321_vm3, %v3163_v40, 0 }
0x19d9   :  { %3564 = vmatprep.mubr.msk.bf16.mxu1 %vm3771_vm1, %v3770_v14  ;;  %3563 = vmatpush3.bf16.msra.mxu1 %v2384_v50 }
0x19da   :  { %3574 = vmatprep.subr.bf16.mxu1 %v3770_v14 }
0x1a00   :  { %v2373_v43 = vpop.f32.mrf.mxu0 }
0x1a02   :  { %v3560_v38 = vpop.f32.mrf.mxu0 }
0x1a04   :  { %v2376_v44 = vpop.f32.mrf.mxu0 }
0x1a06   :  { %v3561_v47 = vpop.f32.mrf.mxu0 }
0x1a8e   :  { %v2473_v51 = vpop.f32.mrf.mxu0 }
0x1a8f   :  { %v2529_v52 = vmul.f32 0.35355338, %v2473_v51 }
0x1a90   :  { %v3572_v56 = vpop.f32.mrf.mxu0 }
0x1a91   :  { %v2531_v58 = vadd.f32 %v2529_v52, %v3902_v60 }
0x1a92   :  { %v2476_v62 = vpop.f32.mrf.mxu0 }
0x1a93   :  { %v2533_v63 = vsel %vm182_vm2, %v2531_v58, -inf  ;;  %v3184_v62 = vld [vmem:[%s4499_s3 + $0xc] ss:$0 sm:$0xff] }
0x1a94   :  { %2534 = vmax.xlane.f32.xlu0 %v2533_v63  ;;  %v3573_v0 = vpop.f32.mrf.mxu0 }
0x1a98   :  { %v2325_v3 = vpop.f32.mrf.mxu1 }
0x1a99   :  { %v2379_v4 = vpack.c.bf16 %v2373_v43, %v2325_v3 }
0x1a9a   :  { %v3554_v5 = vpop.f32.mrf.mxu1 }
0x1a9b   :  { %3565 = vmatmul.mubr.msk.bf16.vlgmr.msra.gmra.mxu1 %vm182_vm2, %v2379_v4 }
0x1a9c   :  { %3575 = vmatpush3.bf16.xpose.msra.mxu1 %v2487_v6  ;;  %v2328_v7 = vpop.f32.mrf.mxu1  ;;  %3576 = vmatprep.mubr.msk.bf16.mxu1 %vm3771_vm1, %v3770_v14 }
0x1a9d   :  { %3586 = vmatprep.subr.bf16.mxu1 %v3770_v14 }
0x1a9e   :  { %v3555_v60 = vpop.f32.mrf.mxu1 }
0x1aa3   :  { %3577 = vmatmul.mubr.msk.bf16.vlgmr.msra.gmra.mxu1 %vm182_vm2, %v2480_v8 }
0x1aa4   :  { %3588 = vmatprep.mubr.msk.bf16.mxu1 %vm3771_vm1, %v3770_v14 }
0x1b1d   :  { %v2535_v10 = vpop.xlane.xlu0 %2534 }
0x1b1e   :  { %v2539_v12 = vsub.f32 %v2531_v58, %v2535_v10 }
0x1b20   :  { %v2541_v13 = vmul.f32 1.442695, %v2539_v12 }
0x1b22   :  { %3740 = vpow2.f32 %v2541_v13 }
0x1b2f   :  { %v3741_v16 = vpop.eup %3740 }
0x1b30   :  { %v2545_v18 = vsel %vm182_vm2, %v3741_v16, 0.0 }
0x1b31   :  { %2546 = vadd.xlane.f32.xlu0 %v2545_v18 }
0x1b5b   :  { %v2420_v20 = vpop.f32.mrf.mxu1 }
0x1b5c   :  { %v2427_v31 = vadd.f32 %v2420_v20, %v2149_v19 }
0x1b5d   :  { %v3566_v21 = vpop.f32.mrf.mxu1 }
0x1b5f   :  { %v2423_v22 = vpop.f32.mrf.mxu1 }
0x1b60   :  { %v2428_v23 = vadd.f32 %v2423_v22, %v2152_v32  ;;  %v3661_v22 = vld [vmem:[%s4502_s6 + $0x10] sm:$0xff]  }
0x1b61   :  { %v3567_v24 = vpop.f32.mrf.mxu1 }
0x1b63   :  { %v2523_v25 = vpop.f32.mrf.mxu1 }
0x1b64   :  { %v2530_v26 = vmul.f32 0.35355338, %v2523_v25 }
0x1b65   :  { %v3578_v27 = vpop.f32.mrf.mxu1 }
0x1b66   :  { %v2532_v28 = vadd.f32 %v2530_v26, %v3905_v2 }
0x1b67   :  { %v2526_v54 = vpop.f32.mrf.mxu1 }
0x1b68   :  { %v2536_v9 = vsel %vm182_vm2, %v2532_v28, -inf }
0x1b69   :  { %2537 = vmax.xlane.f32.xlu1 %v2536_v9  ;;  %v3579_v57 = vpop.f32.mrf.mxu1 }
0x1b6a   :  { %v3185_v57 = vld [vmem:[%s4499_s3 + $0xd] ss:$0 sm:$0xff] }
0x1b7a   :  { %2605 = vrot.lane.b32.xlu1 %v4184_v59, %s3783_s17 }
0x1bba   :  { %v2547_v30 = vpop.xlane.xlu0 %2546 }
0x1bf2   :  { %v2538_v55 = vpop.xlane.xlu1 %2537 }
0x1bf3   :  { %v2540_v15 = vsub.f32 %v2532_v28, %v2538_v55 }
0x1bf5   :  { %v2543_v11 = vmul.f32 1.442695, %v2540_v15 }
0x1bf6   :  { %v2606_v61 = vpop.permute.xlu1 %2605 }
0x1bf7   :  { %3742 = vpow2.f32 %v2543_v11  ;;  %v2611_v17 = vsel %vm321_vm3, %v2606_v61, 0  ;;  %v3186_v61 = vld [vmem:[%s4499_s3 + $0xe] ss:$0 sm:$0xff] }
0x1bf8   :  { %3587 = vmatpush3.bf16.msra.mxu1 %v2611_v17  ;;  %3744 = vrcp.f32 %v2547_v30 }
0x1bf9   :  { %3598 = vmatprep.subr.bf16.mxu1 %v3770_v14 }
0x1c04   :  { %v3743_v29 = vpop.eup %3742 }
0x1c05   :  { %v2548_v2 = vsel %vm182_vm2, %v3743_v29, 0.0  ;;  %v3745_v59 = vpop.eup %3744 }
0x1c06   :  { %2549 = vadd.xlane.f32.xlu0 %v2548_v2  ;;  %v2553_v34 = vmul.f32 %v3745_v59, %v3741_v16  ;;  %v3662_v59 = vld [vmem:[%s4503_s7 + $0x38] sm:$0xff]  }
0x1c08   :  { %v2555_v36 = vpack.c.bf16 %v2553_v34, %v2553_v34  ;;  %v3664_v34 = vld [vmem:[%s4503_s7 + $0x28] sm:$0xff]  }
0x1c1c   :  { %2557 = vrot.lane.b32.xlu0 %v4180_v53, %s3783_s17 }
0x1c8f   :  { %v2550_v33 = vpop.xlane.xlu0 %2549 }
0x1c90   :  { %3746 = vrcp.f32 %v2550_v33  ;;  %v3663_v33 = vld [vmem:[%s4503_s7 + $0x30] sm:$0xff]  }
0x1c93   :  { %v2558_v35 = vpop.permute.xlu0 %2557 }
0x1c94   :  { %v2563_v42 = vsel %vm321_vm3, %v2558_v35, 0  ;;  %v3665_v35 = vld [vmem:[%s4503_s7 + $0x20] sm:$0xff]  }
0x1c95   :  { %3581 = vmatpush3.bf16.msra.mxu0 %v2563_v42  ;;  %v3191_v42 = vld [vmem:[%s4499_s3 + $0xf] ss:$0 sm:$0xff] }
0x1c96   :  { %3592 = vmatprep.subr.bf16.mxu0 %v3770_v14 }
0x1c98   :  { %3583 = vmatmul.mubr.msk.bf16.vlgmr.msra.gmra.mxu0 %vm182_vm2, %v2555_v36 }
0x1c99   :  { %3594 = vmatprep.mubr.msk.bf16.mxu0 %vm3771_vm1, %v3770_v14  ;;  %3593 = vmatpush3.bf16.msra.mxu0 %v2658_v41 }
0x1c9a   :  { %3606 = vmatprep.subr.bf16.mxu0 %v3770_v14 }
0x1c9d   :  { %v3747_v37 = vpop.eup %3746 }
0x1c9e   :  { %v2554_v53 = vmul.f32 %v3747_v37, %v3743_v29 }
0x1ca0   :  { %v2556_v39 = vpack.c.bf16 %v2554_v53, %v2554_v53 }
0x1ca2   :  { %3589 = vmatmul.mubr.msk.bf16.vlgmr.msra.gmra.mxu1 %vm182_vm2, %v2556_v39 }
0x1ca3   :  { %3602 = vmatprep.mubr.msk.bf16.mxu1 %vm3771_vm1, %v3770_v14 }
0x1d58   :  { %v2599_v43 = vpop.f32.mrf.mxu0 }
0x1d5a   :  { %v3584_v38 = vpop.f32.mrf.mxu0 }
0x1d5c   :  { %v2602_v44 = vpop.f32.mrf.mxu0 }
0x1d5e   :  { %v3585_v47 = vpop.f32.mrf.mxu0 }
0x1d62   :  { %v2647_v48 = vpop.f32.mrf.mxu1 }
0x1d63   :  { %v2653_v50 = vpack.c.bf16 %v2647_v48, %v2599_v43 }
0x1d64   :  { %v3590_v51 = vpop.f32.mrf.mxu1 }
0x1d65   :  { %3595 = vmatmul.mubr.msk.bf16.vlgmr.msra.gmra.mxu0 %vm182_vm2, %v2653_v50 }
0x1d66   :  { %v2650_v52 = vpop.f32.mrf.mxu1  ;;  %3614 = vmatprep.mubr.msk.bf16.mxu0 %vm3771_vm1, %v3770_v14  ;;  %3607 = vmatpush3.bf16.msra.mxu0 %v3662_v59 }
0x1d67   :  { %3608 = vmatprep.subr.bf16.mxu0 %v3770_v14 }
0x1d68   :  { %v3591_v56 = vpop.f32.mrf.mxu1 }
0x1d6a   :  { %3609 = vmatpush3.bf16.msra.mxu0 %v3663_v33 }
0x1d6b   :  { %3610 = vmatprep.subr.bf16.mxu0 %v3770_v14 }
0x1d6e   :  { %3611 = vmatpush3.bf16.msra.mxu0 %v3664_v34 }
0x1d6f   :  { %3612 = vmatprep.subr.bf16.mxu0 %v3770_v14 }
0x1d72   :  { %3613 = vmatpush3.bf16.msra.mxu0 %v3665_v35  ;;  %v3210_v35 = vld [vmem:[%s4499_s3 + $0x12] ss:$0 sm:$0xff] }
0x1e25   :  { %v2694_v58 = vpop.f32.mrf.mxu0 }
0x1e26   :  { %v2701_v63 = vadd.f32 %v2694_v58, %v2427_v31 }
0x1e27   :  { %v3596_v0 = vpop.f32.mrf.mxu0 }
0x1e28   :  { %v2708_v1 = vadd.f32 %v3184_v62, %v2701_v63 }
0x1e29   :  { %v2697_v3 = vpop.f32.mrf.mxu0 }
0x1e2a   :  { %v2702_v4 = vadd.f32 %v2697_v3, %v2428_v23  ;;  %v2710_v5 = vadd.f32 %v2708_v1, %v4168_v45 }
0x1e2b   :  { %v3597_v6 = vpop.f32.mrf.mxu0 }
0x1e2c   :  { %v2709_v7 = vadd.f32 %v3184_v62, %v2702_v4  ;;  %v2714_v60 = vsel %vm67_vm0, %v2710_v5, 0.0 }
0x1e2d   :  { %2715 = vadd.xlane.f32.xlu1 %v2714_v60  ;;  %v3203_v60 = vld [vmem:[%s4499_s3 + $0x10] ss:$0 sm:$0xff] }
0x1e2e   :  { %v2711_v8 = vadd.f32 %v2709_v7, %v4170_v46  ;;  %v3660_v46 = vld [vmem:[%s4502_s6 + $0x18] sm:$0xff]  }
0x1e2f   :  { %3599 = vmatpush3.bf16.msra.mxu1 %v3660_v46 }
0x1e30   :  { %v2717_v10 = vsel %vm67_vm0, %v2711_v8, 0.0  ;;  %3600 = vmatprep.subr.bf16.mxu1 %v3770_v14 }
0x1e31   :  { %2718 = vadd.xlane.f32.xlu0 %v2717_v10 }
0x1e33   :  { %3601 = vmatpush3.bf16.msra.mxu1 %v3661_v22 }
0x1e34   :  { %3618 = vmatprep.subr.bf16.mxu1 %v3770_v14 }
0x1eb6   :  { %v2716_v12 = vpop.xlane.xlu1 %2715 }
0x1eb7   :  { %v2720_v13 = vmul.f32 0.03125, %v2716_v12 }
0x1eb9   :  { %v2722_v16 = vsub.f32 %v2710_v5, %v2720_v13 }
0x1eba   :  { %v2719_v18 = vpop.xlane.xlu0 %2718 }
0x1ebb   :  { %v2721_v19 = vmul.f32 0.03125, %v2719_v18  ;;  %v2724_v20 = vmul.f32 %v2722_v16, %v2722_v16 }
0x1ebd   :  { %v2723_v31 = vsub.f32 %v2711_v8, %v2721_v19  ;;  %v2726_v21 = vsel %vm67_vm0, %v2724_v20, 0.0 }
0x1ebe   :  { %2727 = vadd.xlane.f32.xlu0 %v2726_v21 }
0x1ebf   :  { %v2725_v45 = vmul.f32 %v2723_v31, %v2723_v31 }
0x1ec1   :  { %v2729_v32 = vsel %vm67_vm0, %v2725_v45, 0.0 }
0x1ec2   :  { %2730 = vadd.xlane.f32.xlu1 %v2729_v32 }
0x1f47   :  { %v2728_v23 = vpop.xlane.xlu0 %2727 }
0x1f48   :  { %v2732_v24 = vmul.f32 0.03125, %v2728_v23 }
0x1f4a   :  { %v2734_v25 = vadd.f32 1e-12, %v2732_v24 }
0x1f4b   :  { %v2731_v26 = vpop.xlane.xlu1 %2730 }
0x1f4c   :  { %3748 = vrsqrt.f32 %v2734_v25  ;;  %v2733_v27 = vmul.f32 0.03125, %v2731_v26 }
0x1f4e   :  { %v2735_v28 = vadd.f32 1e-12, %v2733_v27 }
0x1f50   :  { %3750 = vrsqrt.f32 %v2735_v28 }
0x1f59   :  { %v3749_v54 = vpop.eup %3748 }
0x1f5a   :  { %v2738_v9 = vmul.f32 %v3749_v54, %v2722_v16  ;;  %v3666_v54 = vld [vmem:[%s4504_s8 + $0x8] sm:$0xff]  }
0x1f5c   :  { %v2744_v11 = vmul.f32 %v3185_v57, %v2738_v9  ;;  %v3667_v9 = vld [vmem:[%s4504_s8] sm:$0xff]  }
0x1f5d   :  { %v3751_v55 = vpop.eup %3750 }
0x1f5e   :  { %v2739_v15 = vmul.f32 %v3751_v55, %v2723_v31  ;;  %v2750_v29 = vadd.f32 %v3186_v61, %v2744_v11 }
0x1f60   :  { %v2745_v17 = vmul.f32 %v3185_v57, %v2739_v15 }
0x1f62   :  { %v2751_v2 = vadd.f32 %v3186_v61, %v2745_v17 }
0x1f64   :  { %v2757_v30 = vpack.c.bf16 %v2751_v2, %v2750_v29 }
0x1f66   :  { %3603 = vmatmul.mubr.msk.bf16.vlgmr.msra.gmra.mxu1 %vm67_vm0, %v2757_v30  ;;  %v3209_v30 = vld [vmem:[%s4499_s3 + $0x11] ss:$0 sm:$0xff] }
0x1f67   :  { %3622 = vmatprep.mubr.msk.bf16.mxu1 %vm3771_vm1, %v3770_v14  ;;  %3619 = vmatpush3.bf16.msra.mxu1 %v3666_v54 }
0x1f68   :  { %3620 = vmatprep.subr.bf16.mxu1 %v3770_v14 }
0x1f6b   :  { %3621 = vmatpush3.bf16.msra.mxu1 %v3667_v9 }
0x2026   :  { %v2812_v36 = vpop.f32.mrf.mxu1 }
0x2027   :  { %v2813_v37 = vadd.f32 %v3191_v42, %v2812_v36 }
0x2028   :  { %v3604_v53 = vpop.f32.mrf.mxu1 }
0x2029   :  { %v2819_v39 = vmul.f32 %v2813_v37, %v2813_v37 }
0x202a   :  { %v2815_v40 = vpop.f32.mrf.mxu1 }
0x202b   :  { %v2821_v41 = vmul.f32 %v2819_v39, %v2813_v37  ;;  %v2816_v43 = vadd.f32 %v3191_v42, %v2815_v40  ;;  %v3784_v39 = vmov 1   ;;  %v4454_v40 = vand.u32 127, %v44_v49 }
0x202c   :  { %v3605_v38 = vpop.f32.mrf.mxu1  ;;  %3647 = vset.pattern.permute.xlu1 %v3784_v39  ;;  %3646 = vset.pattern.permute.xlu0 %v3784_v39 }
0x202d   :  { %v2823_v44 = vmul.f32 0.044715, %v2821_v41  ;;  %v2820_v47 = vmul.f32 %v2816_v43, %v2816_v43  ;;  %v3211_v41 = vld [vmem:[%s4499_s3 + $0x2] ss:$0 sm:$0xff]  ;;  %vm3030_vm5 = vcmp.lt.s32.totalorder %v4454_v40, 5  ;;  %vm3097_vm9 = vcmp.eq.s32.totalorder %v4454_v40, 5 }
0x202f   :  { %v2825_v48 = vadd.f32 %v2823_v44, %v2813_v37  ;;  %v2822_v50 = vmul.f32 %v2820_v47, %v2816_v43 }
0x2031   :  { %v2827_v51 = vmul.f32 0.7978846, %v2825_v48  ;;  %v2824_v52 = vmul.f32 0.044715, %v2822_v50 }
0x2033   :  { %3752 = vtanh.f32 %v2827_v51  ;;  %v2826_v56 = vadd.f32 %v2824_v52, %v2816_v43  ;;  %v34_v52 = vld [vmem:[%s4505_s2 + $0x8] sm:$0xff] }
0x2035   :  { %v2828_v58 = vmul.f32 0.7978846, %v2826_v56  ;;  %v33_v56 = vld [vmem:[%s4505_s2] sm:$0xff] }
0x2037   :  { %3754 = vtanh.f32 %v2828_v58  ;;  %v3628_v58 = vtrunc.f32 %v34_v52 }
0x2040   :  { %v3753_v62 = vpop.eup %3752 }
0x2041   :  { %v2831_v63 = vadd.f32 1.0, %v3753_v62  ;;  %v3626_v62 = vtrunc.f32 %v33_v56 }
0x2043   :  { %v2833_v1 = vmul.f32 0.5, %v2831_v63  ;;  %v3629_v63 = vcvt.f32.s32 %v3628_v58 }
0x2044   :  { %v3755_v0 = vpop.eup %3754 }
0x2045   :  { %v2832_v3 = vadd.f32 1.0, %v3755_v0  ;;  %v2835_v5 = vmul.f32 %v2833_v1, %v2813_v37  ;;  %v3627_v0 = vcvt.f32.s32 %v3626_v62 }
0x2047   :  { %v2834_v4 = vmul.f32 0.5, %v2832_v3 }
0x2049   :  { %v2836_v6 = vmul.f32 %v2834_v4, %v2816_v43 }
0x204b   :  { %v2846_v7 = vpack.c.bf16 %v2836_v6, %v2835_v5 }
0x204d   :  { %3615 = vmatmul.mubr.msk.bf16.vlgmr.msra.gmra.mxu0 %vm1452_vm4, %v2846_v7 }
0x210d   :  { %v2913_v8 = vpop.f32.mrf.mxu0 }
0x210e   :  { %v2914_v10 = vadd.f32 %v3203_v60, %v2913_v8 }
0x210f   :  { %v3616_v12 = vpop.f32.mrf.mxu0 }
0x2110   :  { %v2920_v13 = vadd.f32 %v2914_v10, %v2750_v29 }
0x2111   :  { %v2916_v16 = vpop.f32.mrf.mxu0 }
0x2112   :  { %v2917_v18 = vadd.f32 %v3203_v60, %v2916_v16  ;;  %v2924_v19 = vsel %vm67_vm0, %v2920_v13, 0.0 }
0x2113   :  { %2925 = vadd.xlane.f32.xlu0 %v2924_v19  ;;  %v3617_v20 = vpop.f32.mrf.mxu0 }
0x2114   :  { %v2921_v31 = vadd.f32 %v2917_v18, %v2751_v2 }
0x2116   :  { %v2927_v21 = vsel %vm67_vm0, %v2921_v31, 0.0 }
0x2117   :  { %2928 = vadd.xlane.f32.xlu1 %v2927_v21  ;;  %v3785_v21 = vmov 0  }
0x219c   :  { %v2926_v45 = vpop.xlane.xlu0 %2925 }
0x219d   :  { %v2930_v32 = vmul.f32 0.03125, %v2926_v45  ;;  %v3085_v45 = vsel %vm3075_vm8, %v33_v56, 0.0 }
0x219f   :  { %v2932_v46 = vsub.f32 %v2920_v13, %v2930_v32  ;;  %v3086_v32 = vsel %vm3075_vm8, %v34_v52, 0.0 }
0x21a0   :  { %v2929_v22 = vpop.xlane.xlu1 %2928 }
0x21a1   :  { %v2931_v23 = vmul.f32 0.03125, %v2929_v22  ;;  %v2934_v24 = vmul.f32 %v2932_v46, %v2932_v46 }
0x21a3   :  { %v2933_v25 = vsub.f32 %v2921_v31, %v2931_v23  ;;  %v2936_v26 = vsel %vm67_vm0, %v2934_v24, 0.0 }
0x21a4   :  { %2937 = vadd.xlane.f32.xlu0 %v2936_v26 }
0x21a5   :  { %v2935_v27 = vmul.f32 %v2933_v25, %v2933_v25 }
0x21a7   :  { %v2939_v28 = vsel %vm67_vm0, %v2935_v27, 0.0 }
0x21a8   :  { %2940 = vadd.xlane.f32.xlu1 %v2939_v28 }
0x222d   :  { %v2938_v57 = vpop.xlane.xlu0 %2937 }
0x222e   :  { %v2942_v55 = vmul.f32 0.03125, %v2938_v57 }
0x2230   :  { %v2944_v15 = vadd.f32 1e-12, %v2942_v55 }
0x2231   :  { %v2941_v11 = vpop.xlane.xlu1 %2940 }
0x2232   :  { %3756 = vrsqrt.f32 %v2944_v15  ;;  %v2943_v61 = vmul.f32 0.03125, %v2941_v11 }
0x2234   :  { %v2945_v17 = vadd.f32 1e-12, %v2943_v61 }
0x2236   :  { %3758 = vrsqrt.f32 %v2945_v17 }
0x223f   :  { %v3757_v29 = vpop.eup %3756 }
0x2240   :  { %v2948_v2 = vmul.f32 %v3757_v29, %v2932_v46  ;;  %v3087_v46 = vadd.f32 %v3086_v32, %v3085_v45 }
0x2242   :  { %v2954_v34 = vmul.f32 %v3209_v30, %v2948_v2  ;;  %v3088_v22 = vrot.slane %v3087_v46, 4 }
0x2243   :  { %v3759_v59 = vpop.eup %3758 }
0x2244   :  { %v2949_v33 = vmul.f32 %v3759_v59, %v2933_v25  ;;  %v2960_v36 = vadd.f32 %v3210_v35, %v2954_v34  ;;  %v3089_v24 = vadd.f32 %v3088_v22, %v3087_v46 }
0x2246   :  { %v2955_v42 = vmul.f32 %v3209_v30, %v2949_v33  ;;  %v3090_v25 = vrot.slane %v3089_v24, 2 }
0x2248   :  { %v2961_v37 = vadd.f32 %v3210_v35, %v2955_v42  ;;  %v3091_v26 = vadd.f32 %v3090_v25, %v3089_v24 }
0x224a   :  { %v2966_v53 = vpack.c.bf16 %v2961_v37, %v2960_v36  ;;  %v3092_v27 = vrot.slane %v3091_v26, 1 }
0x224c   :  { %3623 = vmatmul.mubr.msk.bf16.vlgmr.msra.gmra.mxu1 %vm67_vm0, %v2966_v53  ;;  %v3093_v57 = vadd.f32 %v3092_v27, %v3091_v26 }
0x224e   :  { %v3094_v61 = vmax.f32 %v3093_v57, 1.0 }
0x230c   :  { %v3021_v43 = vpop.f32.mrf.mxu1 }
0x230d   :  { %v4460_v38 = vadd.f32 %v3211_v41, %v3021_v43 }
0x230e   :  { %v3624_v44 = vpop.f32.mrf.mxu1 }
0x230f   :  { %v3031_v47 = vsel %vm3030_vm5, %v4460_v38, -1e+30 }
0x2310   :  { %3033 = vmax.xlane.f32.xlu0 %v3031_v47  ;;  %v3024_v48 = vpop.f32.mrf.mxu1 }
0x2311   :  { %v4465_v50 = vadd.f32 %v3211_v41, %v3024_v48 }
0x2312   :  { %v3625_v49 = vpop.f32.mrf.mxu1 }
0x2313   :  { %v3032_v51 = vsel %vm3030_vm5, %v4465_v50, -1e+30 }
0x2314   :  { %3035 = vmax.xlane.f32.xlu1 %v3032_v51 }
0x2325   :  { %3057 = vperm.xlu1 %3647, %v3629_v63  }
0x2326   :  { %3054 = vperm.xlu0 %3646, %v3627_v0  }
0x2329   :  { %3648 = vset.pattern.permute.xlu1 %v3785_v21 }
0x232a   :  { %3649 = vset.pattern.permute.xlu0 %v3785_v21 }
0x2399   :  { %v3034_v1 = vpop.xlane.xlu0 %3033 }
0x239a   :  { %v3037_v3 = vsub.f32 %v3031_v47, %v3034_v1 }
0x239c   :  { %v3039_v4 = vmul.f32 1.442695, %v3037_v3 }
0x239d   :  { %v3036_v5 = vpop.xlane.xlu1 %3035 }
0x239e   :  { %3760 = vpow2.f32 %v3039_v4  ;;  %v3038_v6 = vsub.f32 %v3032_v51, %v3036_v5 }
0x23a0   :  { %v3041_v7 = vmul.f32 1.442695, %v3038_v6 }
0x23a1   :  { %v3055_v60 = vpop.permute.xlu0 %3054  ;;  %v3058_v8 = vpop.permute.xlu1 %3057 }
0x23a2   :  { %3762 = vpow2.f32 %v3041_v7  ;;  %vm3059_vm6 = vcmp.eq.s32.totalorder %v4454_v40, %v3055_v60  ;;  %vm3060_vm7 = vcmp.eq.s32.totalorder %v4454_v40, %v3058_v8 }
0x23a3   :  { %v3215_v12 = vsel %vm3059_vm6, 1.0, %v3770_v14  ;;  %v3216_v19 = vsel %vm3060_vm7, 1.0, %v3770_v14 }
0x23a4   :  { %v3065_v18 = vmul.f32 %v3215_v12, %v3037_v3  ;;  %v3066_v31 = vmul.f32 %v3216_v19, %v3038_v6 }
0x23ab   :  { %v3761_v10 = vpop.eup %3760 }
0x23ac   :  { %v3043_v13 = vsel %vm3030_vm5, %v3761_v10, 0.0 }
0x23ad   :  { %3045 = vadd.xlane.f32.xlu1 %v3043_v13 }
0x23af   :  { %v3763_v16 = vpop.eup %3762 }
0x23b0   :  { %v3044_v20 = vsel %vm3030_vm5, %v3763_v16, 0.0 }
0x23b1   :  { %3067 = vadd.xlane.f32.xlu1 %v3065_v18  ;;  %3047 = vadd.xlane.f32.xlu0 %v3044_v20 }
0x23b5   :  { %3069 = vadd.xlane.f32.xlu1 %v3066_v31 }
0x2436   :  { %v3046_v23 = vpop.xlane.xlu1 %3045 }
0x2437   :  { %3764 = vlog2.f32 %v3046_v23 }
0x243a   :  { %v3048_v14 = vpop.xlane.xlu0 %3047  ;;  %v3068_v54 = vpop.xlane.xlu1 %3067 }
0x243b   :  { %3766 = vlog2.f32 %v3048_v14 }
0x243c   :  { %3768 = vrcp.f32 %v3094_v61 }
0x243e   :  { %v3070_v17 = vpop.xlane.xlu1 %3069 }
0x2444   :  { %v3765_v28 = vpop.eup %3764 }
0x2445   :  { %v3050_v9 = vmul.f32 0.6931472, %v3765_v28 }
0x2447   :  { %v3071_v55 = vsub.f32 %v3050_v9, %v3068_v54 }
0x2448   :  { %v3767_v15 = vpop.eup %3766 }
0x2449   :  { %v3052_v11 = vmul.f32 0.6931472, %v3767_v15  ;;  %v3073_v29 = vmul.f32 %v3071_v55, %v33_v56  ;;  %v3769_v39 = vpop.eup %3768 }
0x244b   :  { %v3072_v2 = vsub.f32 %v3052_v11, %v3070_v17  ;;  %v3076_v59 = vsel %vm3075_vm8, %v3073_v29, 0.0 }
0x244d   :  { %v3074_v30 = vmul.f32 %v3072_v2, %v34_v52 }
0x244f   :  { %v3077_v33 = vsel %vm3075_vm8, %v3074_v30, 0.0 }
0x2450   :  { %v3078_v34 = vadd.f32 %v3077_v33, %v3076_v59 }
0x2452   :  { %v3079_v35 = vrot.slane %v3078_v34, 4 }
0x2454   :  { %v3080_v42 = vadd.f32 %v3079_v35, %v3078_v34 }
0x2456   :  { %v3081_v36 = vrot.slane %v3080_v42, 2 }
0x2458   :  { %v3082_v37 = vadd.f32 %v3081_v36, %v3080_v42 }
0x245a   :  { %v3083_v53 = vrot.slane %v3082_v37, 1 }
0x245c   :  { %v3084_v41 = vadd.f32 %v3083_v53, %v3082_v37 }
0x245e   :  { %v3096_v43 = vmul.f32 %v3769_v39, %v3084_v41 }
0x2460   :  { %3100 = vperm.xlu1 %3648, %v3096_v43  }
0x24db   :  { %v3101_v44 = vpop.permute.xlu1 %3100 }
0x24dc   :  { %v3103_v47 = vsel %vm3097_vm9, %v3101_v44, %v4460_v38  ;;  %v3104_v48 = vsel %vm3097_vm9, %v3101_v44, %v4465_v50 }
0x24dd   :  { %3105 = vst [vmem:[%s4506_s9] sm:$0xff] %v3103_v47  ;;  %3106 = vst [vmem:[%s4506_s9 + $0x8] sm:$0xff] %v3104_v48 }

</bundles_post_ra>
